<compile_context>
chip_gen: v7x
topology: tpu7x:2x2x1
jax: 0.10.0
libtpu: 0.0.40
codegen_flags: <defaults>
</compile_context>

<pallas_src>
import math
import functools

import jax
import jax.numpy as jnp
from jax import lax
from jax.experimental import pallas as pl
from jax.experimental.pallas import tpu as pltpu

_LOGITS_PAD = 128   # lane-dense padded width of the logits output
_PE_MAX_LEN = 64    # BackBone(..., max_len=64) default


# ------------------------------------------------------------------ fused kernel

def _classifier_kernel(
    # inputs ------------------------------------------------------------------
    x_ref,        # (B*S, in_dim)  bf16
    wcomb_ref,    # (in_dim, D)    bf16  fused Classifier.input_linear @ BackBone.input_linear
    biaspe_ref,   # (B*S, D)       f32   fused biases + positional encoding (batch-tiled)
    wqkv_ref,     # (L, D, 3D)     bf16  fused Q|K|V projection per layer
    bqkv_ref,     # (L, 1, 3D)     f32
    wo_ref,       # (L, D, D)      bf16  attention out-projection
    w1_ref,       # (L, D, F)      bf16  FFN linear 1
    b1_ref,       # (L, 1, F)      f32
    w2_ref,       # (L, F, D)      bf16  FFN linear 2
    small_ref,    # (L, 6, D)      f32   packed [bo, b2, ln1_g, ln1_b, ln2_g, ln2_b]
    ow_ref,       # (D, 128)       bf16  output linear, lane-padded
    ob_ref,       # (1, 128)       f32
    # outputs -----------------------------------------------------------------
    out_ref,      # (B, 128)       f32   padded logits
    *, batch, seq, num_layers, nhead, eps,
):
    d_model = wo_ref.shape[-1]
    Dh = d_model // nhead
    scale = 1.0 / math.sqrt(Dh)
    bf16 = jnp.bfloat16

    def layernorm(v, g, b):
        mu = jnp.mean(v, axis=-1, keepdims=True)
        var = jnp.mean((v - mu) ** 2, axis=-1, keepdims=True)
        return (v - mu) * lax.rsqrt(var + eps) * g + b

    # Fused (Classifier.input_linear -> BackBone.input_linear) + bias + PE,
    # over all B*S rows at once.
    h = (jnp.dot(x_ref[...], wcomb_ref[...], preferred_element_type=jnp.float32)
         + biaspe_ref[...])                                           # (B*S, D) f32

    # Transformer encoder layers (post-norm, ReLU FFN, dropout = identity).
    for l in range(num_layers):
        sm = small_ref[l]                          # (6, D) f32
        bo, b2 = sm[0:1, :], sm[1:2, :]
        ln1g, ln1b = sm[2:3, :], sm[3:4, :]
        ln2g, ln2b = sm[4:5, :], sm[5:6, :]

        # ---- self attention: fused QKV over all batch rows ----
        qkv = (jnp.dot(h.astype(bf16), wqkv_ref[l],
                       preferred_element_type=jnp.float32) + bqkv_ref[l])   # (B*S, 3D)
        q = qkv[:, 0:d_model]
        k = qkv[:, d_model:2 * d_model]
        v = qkv[:, 2 * d_model:3 * d_model]

        # Per (batch, head) attention; all results stay register-resident
        # (no VMEM scratch, no masked column stores).
        attn_rows = []
        for b in range(batch):
            r0 = b * seq
            qb = q[r0:r0 + seq, :]
            kb = k[r0:r0 + seq, :]
            vb = v[r0:r0 + seq, :]
            head_outs = []
            for hh in range(nhead):
                lo = hh * Dh
                qh = qb[:, lo:lo + Dh].astype(bf16)
                kh = kb[:, lo:lo + Dh].astype(bf16)
                vh = vb[:, lo:lo + Dh].astype(bf16)
                # scores = qh @ kh^T  (contract-last/last dimension numbers:
                # the MXU consumes the transposed RHS directly)
                s = lax.dot_general(qh, kh, (((1,), (1,)), ((), ())),
                                    preferred_element_type=jnp.float32) * scale  # (S, S)
                m = jnp.max(s, axis=-1, keepdims=True)
                p = jnp.exp(s - m)
                p = p * pl.reciprocal(jnp.sum(p, axis=-1, keepdims=True), approx=True)
                head_outs.append(jnp.dot(p.astype(bf16), vh,
                                         preferred_element_type=jnp.float32))    # (S, Dh)
            attn_rows.append(jnp.concatenate(head_outs, axis=-1))    # (S, D)
        attn = jnp.concatenate(attn_rows, axis=0)                    # (B*S, D)

        attn = (jnp.dot(attn.astype(bf16), wo_ref[l],
                        preferred_element_type=jnp.float32) + bo)
        h = layernorm(h + attn, ln1g, ln1b)                          # norm1

        # ---- feed forward (ReLU) ----
        ff = (jnp.dot(h.astype(bf16), w1_ref[l],
                      preferred_element_type=jnp.float32) + b1_ref[l])
        ff = jnp.maximum(ff, 0.0)
        ff = (jnp.dot(ff.astype(bf16), w2_ref[l],
                      preferred_element_type=jnp.float32) + b2)
        h = layernorm(h + ff, ln2g, ln2b)                            # norm2

    # Last sequence row of every batch element -> output linear (lane-dense store).
    last = jnp.concatenate(
        [h[b * seq + seq - 1: b * seq + seq, :] for b in range(batch)], axis=0)  # (B, D)
    logits = (jnp.dot(last.astype(bf16), ow_ref[...],
                      preferred_element_type=jnp.float32) + ob_ref[...])          # (B, 128)
    out_ref[...] = logits.astype(out_ref.dtype)


# ---------------------------------------------------------------- model glue

def positional_encoding(seq_len, d_model, max_len=_PE_MAX_LEN):
    pos = jnp.arange(max_len, dtype=jnp.float32)[:, None]
    div = jnp.exp(jnp.arange(0, d_model, 2, dtype=jnp.float32)
                  * (-math.log(10000.0) / d_model))
    pe = jnp.zeros((max_len, d_model), dtype=jnp.float32)
    pe = pe.at[:, 0::2].set(jnp.sin(pos * div))
    pe = pe.at[:, 1::2].set(jnp.cos(pos * div))
    return pe[:seq_len]                       # (S, d_model); requires S <= max_len


def init_params(key, input_dim, d_model, nhead, num_layers, dim_ff, num_classes):
    def dense(k, fan_in, fan_out):
        kw, kb = jax.random.split(k)
        bound = 1.0 / math.sqrt(fan_in)
        w = jax.random.uniform(kw, (fan_in, fan_out), jnp.float32, -bound, bound)
        b = jax.random.uniform(kb, (fan_out,), jnp.float32, -bound, bound)
        return w, b

    keys = jax.random.split(key, 3 + num_layers)
    p = {}
    p["in_w"], p["in_b"] = dense(keys[0], input_dim, d_model)       # Classifier.input_linear
    p["bb_in_w"], p["bb_in_b"] = dense(keys[1], d_model, d_model)   # BackBone.input_linear
    p["out_w"], p["out_b"] = dense(keys[2], d_model, num_classes)   # Classifier.output_linear

    wqkv, bqkv, wo, bo = [], [], [], []
    w1, b1, w2, b2 = [], [], [], []
    ln1g, ln1b, ln2g, ln2b = [], [], [], []
    for li in range(num_layers):
        lk = jax.random.split(keys[3 + li], 4)
        w, b = dense(lk[0], d_model, 3 * d_model)   # fused Q|K|V projection
        wqkv.append(w); bqkv.append(b.reshape(1, -1))
        w, b = dense(lk[1], d_model, d_model)
        wo.append(w); bo.append(b.reshape(1, -1))
        w, b = dense(lk[2], d_model, dim_ff)
        w1.append(w); b1.append(b.reshape(1, -1))
        w, b = dense(lk[3], dim_ff, d_model)
        w2.append(w); b2.append(b.reshape(1, -1))
        ln1g.append(jnp.ones((1, d_model), jnp.float32))
        ln1b.append(jnp.zeros((1, d_model), jnp.float32))
        ln2g.append(jnp.ones((1, d_model), jnp.float32))
        ln2b.append(jnp.zeros((1, d_model), jnp.float32))

    stack = lambda xs: jnp.stack(xs, axis=0)
    p["wqkv"], p["bqkv"] = stack(wqkv), stack(bqkv)
    p["wo"], p["bo"] = stack(wo), stack(bo)
    p["w1"], p["b1"] = stack(w1), stack(b1)
    p["w2"], p["b2"] = stack(w2), stack(b2)
    p["ln1_g"], p["ln1_b"] = stack(ln1g), stack(ln1b)
    p["ln2_g"], p["ln2_b"] = stack(ln2g), stack(ln2b)
    return p


def _full_spec(arr):
    """Whole-array block (VMEM-resident for the single grid step)."""
    nd = arr.ndim
    return pl.BlockSpec(arr.shape, lambda i, _nd=nd: (0,) * _nd)


@functools.partial(jax.jit, static_argnums=(2, 3))
def classifier_forward(x, p, nhead, num_classes):
    """x: (B, S, input_dim) -> logits (B, num_classes). Single fused pallas_call."""
    B, S, in_dim = x.shape
    d_model = p["bb_in_w"].shape[1]
    num_layers = p["wqkv"].shape[0]
    assert S <= _PE_MAX_LEN, "PositionalEncoding max_len=64 requires S <= 64"
    assert num_classes <= _LOGITS_PAD
    assert d_model % nhead == 0

    bf16 = jnp.bfloat16
    pe = positional_encoding(S, d_model)                         # (S, D)

    # Fuse Classifier.input_linear -> BackBone.input_linear (no nonlinearity between
    # them; dropout is identity in eval mode), and fold the bias + PE into one tensor.
    w_comb = (p["in_w"] @ p["bb_in_w"]).astype(bf16)             # (in_dim, D)
    bias_pe = (p["in_b"] @ p["bb_in_w"] + p["bb_in_b"])[None, :] + pe   # (S, D)
    bias_pe = jnp.tile(bias_pe, (B, 1))                          # (B*S, D)

    # Pack the small per-layer (1, D) params into one (L, 6, D) input.
    small = jnp.concatenate(
        [p["bo"], p["b2"], p["ln1_g"], p["ln1_b"], p["ln2_g"], p["ln2_b"]], axis=1)

    # Pad output projection to 128 lanes so the final store is lane-dense.
    ow_pad = (jnp.zeros((d_model, _LOGITS_PAD), jnp.float32)
              .at[:, :num_classes].set(p["out_w"]).astype(bf16))
    ob_pad = (jnp.zeros((1, _LOGITS_PAD), jnp.float32)
              .at[:, :num_classes].set(p["out_b"].reshape(1, -1)))

    inputs = (
        x.reshape(B * S, in_dim).astype(bf16),                   # (B*S, in_dim)
        w_comb,
        bias_pe,
        p["wqkv"].astype(bf16), p["bqkv"],
        p["wo"].astype(bf16),
        p["w1"].astype(bf16), p["b1"],
        p["w2"].astype(bf16),
        small,
        ow_pad, ob_pad,
    )

    # TODO(synk): heads are still processed with a small per-head loop; a head-batched
    # einsum over a (nhead, S, S) score slab could cut a few more XLU/VPU ops per layer.
    out = pl.pallas_call(
        functools.partial(_classifier_kernel, batch=B, seq=S,
                          num_layers=num_layers, nhead=nhead, eps=1e-5),
        out_shape=jax.ShapeDtypeStruct((B, _LOGITS_PAD), jnp.float32),
        grid=(1,),                                               # whole batch in one step
        in_specs=[_full_spec(a) for a in inputs],
        out_specs=pl.BlockSpec((B, _LOGITS_PAD), lambda i: (0, 0)),
        compiler_params=pltpu.CompilerParams(dimension_semantics=("arbitrary",)),
    )(*inputs)

    return out[:, :num_classes]


# --------------------------------------------------------------------- main

if __name__ == "__main__":
    # small shapes consistent with the module
    B, S = 2, 8
    input_dim_latent_representation = 16
    num_classes = 5
    params_cfg = dict(
        d_model_classifier=32,
        nhead_classifier=4,
        num_layers_classifier=2,
        dim_feedforward_classifier=64,
        dropout_classifier=0.1,   # identity in eval mode
    )

    key = jax.random.PRNGKey(0)
    kx, kp = jax.random.split(key)
    x = jax.random.normal(kx, (B, S, input_dim_latent_representation), jnp.float32)

    params = init_params(
        kp,
        input_dim_latent_representation,
        params_cfg["d_model_classifier"],
        params_cfg["nhead_classifier"],
        params_cfg["num_layers_classifier"],
        params_cfg["dim_feedforward_classifier"],
        num_classes,
    )

    logits = classifier_forward(x, params, params_cfg["nhead_classifier"], num_classes)
    jax.block_until_ready(logits)
    assert logits.shape == (B, num_classes)
    print("KERNEL_OK")
</pallas_src>

<mosaic_0001>
module attributes {stable_mosaic.version = 11 : i64} {
  func.func @_classifier_kernel(%arg0: i32, %arg1: memref<16x16xbf16, #tpu.memory_space<vmem>>, %arg2: memref<16x32xbf16, #tpu.memory_space<vmem>>, %arg3: memref<16x32xf32, #tpu.memory_space<vmem>>, %arg4: memref<2x32x96xbf16, #tpu.memory_space<vmem>>, %arg5: memref<2x1x96xf32, #tpu.memory_space<vmem>>, %arg6: memref<2x32x32xbf16, #tpu.memory_space<vmem>>, %arg7: memref<2x32x64xbf16, #tpu.memory_space<vmem>>, %arg8: memref<2x1x64xf32, #tpu.memory_space<vmem>>, %arg9: memref<2x64x32xbf16, #tpu.memory_space<vmem>>, %arg10: memref<2x6x32xf32, #tpu.memory_space<vmem>>, %arg11: memref<32x128xbf16, #tpu.memory_space<vmem>>, %arg12: memref<1x128xf32, #tpu.memory_space<vmem>>, %arg13: memref<2x128xf32, #tpu.memory_space<vmem>>) attributes {dimension_semantics = [#tpu.dimension_semantics<arbitrary>], iteration_bounds = array<i64: 1>, scalar_prefetch = 0 : i64, scratch_operands = 0 : i64, tpu.core_type = #tpu.core_type<tc>, window_params = [{pipeline_mode = #tpu.pipeline_mode<synchronous>, transform_indices = @transform_0, window_bounds = array<i64: 16, 16>}, {pipeline_mode = #tpu.pipeline_mode<synchronous>, transform_indices = @transform_1, window_bounds = array<i64: 16, 32>}, {pipeline_mode = #tpu.pipeline_mode<synchronous>, transform_indices = @transform_2, window_bounds = array<i64: 16, 32>}, {pipeline_mode = #tpu.pipeline_mode<synchronous>, transform_indices = @transform_3, window_bounds = array<i64: 2, 32, 96>}, {pipeline_mode = #tpu.pipeline_mode<synchronous>, transform_indices = @transform_4, window_bounds = array<i64: 2, 1, 96>}, {pipeline_mode = #tpu.pipeline_mode<synchronous>, transform_indices = @transform_5, window_bounds = array<i64: 2, 32, 32>}, {pipeline_mode = #tpu.pipeline_mode<synchronous>, transform_indices = @transform_6, window_bounds = array<i64: 2, 32, 64>}, {pipeline_mode = #tpu.pipeline_mode<synchronous>, transform_indices = @transform_7, window_bounds = array<i64: 2, 1, 64>}, {pipeline_mode = #tpu.pipeline_mode<synchronous>, transform_indices = @transform_8, window_bounds = array<i64: 2, 64, 32>}, {pipeline_mode = #tpu.pipeline_mode<synchronous>, transform_indices = @transform_9, window_bounds = array<i64: 2, 6, 32>}, {pipeline_mode = #tpu.pipeline_mode<synchronous>, transform_indices = @transform_10, window_bounds = array<i64: 32, 128>}, {pipeline_mode = #tpu.pipeline_mode<synchronous>, transform_indices = @transform_11, window_bounds = array<i64: 1, 128>}, {pipeline_mode = #tpu.pipeline_mode<synchronous>, transform_indices = @transform_12, window_bounds = array<i64: 2, 128>}]} {
    %c0 = arith.constant 0 : index
    %c0_0 = arith.constant 0 : index
    %0 = vector.load %arg1[%c0, %c0_0] : memref<16x16xbf16, #tpu.memory_space<vmem>>, vector<16x16xbf16>
    %c0_1 = arith.constant 0 : index
    %c0_2 = arith.constant 0 : index
    %1 = vector.load %arg2[%c0_1, %c0_2] : memref<16x32xbf16, #tpu.memory_space<vmem>>, vector<16x32xbf16>
    %cst = arith.constant dense<0.000000e+00> : vector<16x32xf32>
    %2 = tpu.matmul %0, %1, %cst {dimension_numbers = #tpu.dot_dimension_numbers<[1], [0], [0], [1], [0, 0, 1, 1], [], []>} : vector<16x16xbf16>, vector<16x32xbf16>, vector<16x32xf32> -> vector<16x32xf32>
    %c0_3 = arith.constant 0 : index
    %c0_4 = arith.constant 0 : index
    %3 = vector.load %arg3[%c0_3, %c0_4] : memref<16x32xf32, #tpu.memory_space<vmem>>, vector<16x32xf32>
    %4 = arith.addf %2, %3 : vector<16x32xf32>
    %c0_5 = arith.constant 0 : index
    %c0_6 = arith.constant 0 : index
    %c0_7 = arith.constant 0 : index
    %5 = vector.load %arg10[%c0_5, %c0_6, %c0_7] : memref<2x6x32xf32, #tpu.memory_space<vmem>>, vector<1x6x32xf32>
    %6 = vector.shape_cast %5 : vector<1x6x32xf32> to vector<6x32xf32>
    %7 = vector.extract_strided_slice %6 {offsets = [0, 0], sizes = [1, 32], strides = [1, 1]} : vector<6x32xf32> to vector<1x32xf32>
    %8 = vector.extract_strided_slice %6 {offsets = [1, 0], sizes = [1, 32], strides = [1, 1]} : vector<6x32xf32> to vector<1x32xf32>
    %9 = vector.extract_strided_slice %6 {offsets = [2, 0], sizes = [1, 32], strides = [1, 1]} : vector<6x32xf32> to vector<1x32xf32>
    %10 = vector.extract_strided_slice %6 {offsets = [3, 0], sizes = [1, 32], strides = [1, 1]} : vector<6x32xf32> to vector<1x32xf32>
    %11 = vector.extract_strided_slice %6 {offsets = [4, 0], sizes = [1, 32], strides = [1, 1]} : vector<6x32xf32> to vector<1x32xf32>
    %12 = vector.extract_strided_slice %6 {offsets = [5, 0], sizes = [1, 32], strides = [1, 1]} : vector<6x32xf32> to vector<1x32xf32>
    %13 = arith.truncf %4 : vector<16x32xf32> to vector<16x32xbf16>
    %c0_8 = arith.constant 0 : index
    %c0_9 = arith.constant 0 : index
    %c0_10 = arith.constant 0 : index
    %14 = vector.load %arg4[%c0_8, %c0_9, %c0_10] : memref<2x32x96xbf16, #tpu.memory_space<vmem>>, vector<1x32x96xbf16>
    %15 = vector.shape_cast %14 : vector<1x32x96xbf16> to vector<32x96xbf16>
    %cst_11 = arith.constant dense<0.000000e+00> : vector<16x96xf32>
    %16 = tpu.matmul %13, %15, %cst_11 {dimension_numbers = #tpu.dot_dimension_numbers<[1], [0], [0], [1], [0, 0, 1, 1], [], []>} : vector<16x32xbf16>, vector<32x96xbf16>, vector<16x96xf32> -> vector<16x96xf32>
    %c0_12 = arith.constant 0 : index
    %c0_13 = arith.constant 0 : index
    %c0_14 = arith.constant 0 : index
    %17 = vector.load %arg5[%c0_12, %c0_13, %c0_14] : memref<2x1x96xf32, #tpu.memory_space<vmem>>, vector<1x1x96xf32>
    %18 = vector.shape_cast %17 : vector<1x1x96xf32> to vector<1x96xf32>
    %19 = vector.broadcast %18 : vector<1x96xf32> to vector<16x96xf32>
    %20 = arith.addf %16, %19 : vector<16x96xf32>
    %21 = vector.extract_strided_slice %20 {offsets = [0, 0], sizes = [16, 32], strides = [1, 1]} : vector<16x96xf32> to vector<16x32xf32>
    %22 = vector.extract_strided_slice %20 {offsets = [0, 32], sizes = [16, 32], strides = [1, 1]} : vector<16x96xf32> to vector<16x32xf32>
    %23 = vector.extract_strided_slice %20 {offsets = [0, 64], sizes = [16, 32], strides = [1, 1]} : vector<16x96xf32> to vector<16x32xf32>
    %24 = vector.extract_strided_slice %21 {offsets = [0, 0], sizes = [8, 32], strides = [1, 1]} : vector<16x32xf32> to vector<8x32xf32>
    %25 = vector.extract_strided_slice %22 {offsets = [0, 0], sizes = [8, 32], strides = [1, 1]} : vector<16x32xf32> to vector<8x32xf32>
    %26 = vector.extract_strided_slice %23 {offsets = [0, 0], sizes = [8, 32], strides = [1, 1]} : vector<16x32xf32> to vector<8x32xf32>
    %27 = vector.extract_strided_slice %24 {offsets = [0, 0], sizes = [8, 8], strides = [1, 1]} : vector<8x32xf32> to vector<8x8xf32>
    %28 = arith.truncf %27 : vector<8x8xf32> to vector<8x8xbf16>
    %29 = vector.extract_strided_slice %25 {offsets = [0, 0], sizes = [8, 8], strides = [1, 1]} : vector<8x32xf32> to vector<8x8xf32>
    %30 = arith.truncf %29 : vector<8x8xf32> to vector<8x8xbf16>
    %31 = vector.extract_strided_slice %26 {offsets = [0, 0], sizes = [8, 8], strides = [1, 1]} : vector<8x32xf32> to vector<8x8xf32>
    %32 = arith.truncf %31 : vector<8x8xf32> to vector<8x8xbf16>
    %cst_15 = arith.constant dense<0.000000e+00> : vector<8x8xf32>
    %33 = tpu.matmul %28, %30, %cst_15 {dimension_numbers = #tpu.dot_dimension_numbers<[1], [1], [0], [0], [0, 0, 1, 0], [], []>} : vector<8x8xbf16>, vector<8x8xbf16>, vector<8x8xf32> -> vector<8x8xf32>
    %cst_16 = arith.constant 0.353553385 : f32
    %34 = vector.broadcast %cst_16 : f32 to vector<8x8xf32>
    %35 = arith.mulf %33, %34 : vector<8x8xf32>
    %cst_17 = arith.constant dense<0xFF800000> : vector<8xf32>
    %36 = vector.multi_reduction <maximumf>, %35, %cst_17 [1] : vector<8x8xf32> to vector<8xf32>
    %37 = vector.shape_cast %36 : vector<8xf32> to vector<8x1xf32>
    %38 = vector.broadcast %37 : vector<8x1xf32> to vector<8x8xf32>
    %39 = arith.subf %35, %38 : vector<8x8xf32>
    %40 = math.exp %39 : vector<8x8xf32>
    %cst_18 = arith.constant dense<0.000000e+00> : vector<8xf32>
    %41 = vector.multi_reduction <add>, %40, %cst_18 [1] : vector<8x8xf32> to vector<8xf32>
    %42 = vector.shape_cast %41 : vector<8xf32> to vector<8x1xf32>
    %43 = tpu.reciprocal %42 {approx = true} : vector<8x1xf32> -> vector<8x1xf32>
    %44 = vector.broadcast %43 : vector<8x1xf32> to vector<8x8xf32>
    %45 = arith.mulf %40, %44 : vector<8x8xf32>
    %46 = arith.truncf %45 : vector<8x8xf32> to vector<8x8xbf16>
    %cst_19 = arith.constant dense<0.000000e+00> : vector<8x8xf32>
    %47 = tpu.matmul %46, %32, %cst_19 {dimension_numbers = #tpu.dot_dimension_numbers<[1], [0], [0], [1], [0, 0, 1, 1], [], []>} : vector<8x8xbf16>, vector<8x8xbf16>, vector<8x8xf32> -> vector<8x8xf32>
    %48 = vector.extract_strided_slice %24 {offsets = [0, 8], sizes = [8, 8], strides = [1, 1]} : vector<8x32xf32> to vector<8x8xf32>
    %49 = arith.truncf %48 : vector<8x8xf32> to vector<8x8xbf16>
    %50 = vector.extract_strided_slice %25 {offsets = [0, 8], sizes = [8, 8], strides = [1, 1]} : vector<8x32xf32> to vector<8x8xf32>
    %51 = arith.truncf %50 : vector<8x8xf32> to vector<8x8xbf16>
    %52 = vector.extract_strided_slice %26 {offsets = [0, 8], sizes = [8, 8], strides = [1, 1]} : vector<8x32xf32> to vector<8x8xf32>
    %53 = arith.truncf %52 : vector<8x8xf32> to vector<8x8xbf16>
    %cst_20 = arith.constant dense<0.000000e+00> : vector<8x8xf32>
    %54 = tpu.matmul %49, %51, %cst_20 {dimension_numbers = #tpu.dot_dimension_numbers<[1], [1], [0], [0], [0, 0, 1, 0], [], []>} : vector<8x8xbf16>, vector<8x8xbf16>, vector<8x8xf32> -> vector<8x8xf32>
    %cst_21 = arith.constant 0.353553385 : f32
    %55 = vector.broadcast %cst_21 : f32 to vector<8x8xf32>
    %56 = arith.mulf %54, %55 : vector<8x8xf32>
    %cst_22 = arith.constant dense<0xFF800000> : vector<8xf32>
    %57 = vector.multi_reduction <maximumf>, %56, %cst_22 [1] : vector<8x8xf32> to vector<8xf32>
    %58 = vector.shape_cast %57 : vector<8xf32> to vector<8x1xf32>
    %59 = vector.broadcast %58 : vector<8x1xf32> to vector<8x8xf32>
    %60 = arith.subf %56, %59 : vector<8x8xf32>
    %61 = math.exp %60 : vector<8x8xf32>
    %cst_23 = arith.constant dense<0.000000e+00> : vector<8xf32>
    %62 = vector.multi_reduction <add>, %61, %cst_23 [1] : vector<8x8xf32> to vector<8xf32>
    %63 = vector.shape_cast %62 : vector<8xf32> to vector<8x1xf32>
    %64 = tpu.reciprocal %63 {approx = true} : vector<8x1xf32> -> vector<8x1xf32>
    %65 = vector.broadcast %64 : vector<8x1xf32> to vector<8x8xf32>
    %66 = arith.mulf %61, %65 : vector<8x8xf32>
    %67 = arith.truncf %66 : vector<8x8xf32> to vector<8x8xbf16>
    %cst_24 = arith.constant dense<0.000000e+00> : vector<8x8xf32>
    %68 = tpu.matmul %67, %53, %cst_24 {dimension_numbers = #tpu.dot_dimension_numbers<[1], [0], [0], [1], [0, 0, 1, 1], [], []>} : vector<8x8xbf16>, vector<8x8xbf16>, vector<8x8xf32> -> vector<8x8xf32>
    %69 = vector.extract_strided_slice %24 {offsets = [0, 16], sizes = [8, 8], strides = [1, 1]} : vector<8x32xf32> to vector<8x8xf32>
    %70 = arith.truncf %69 : vector<8x8xf32> to vector<8x8xbf16>
    %71 = vector.extract_strided_slice %25 {offsets = [0, 16], sizes = [8, 8], strides = [1, 1]} : vector<8x32xf32> to vector<8x8xf32>
    %72 = arith.truncf %71 : vector<8x8xf32> to vector<8x8xbf16>
    %73 = vector.extract_strided_slice %26 {offsets = [0, 16], sizes = [8, 8], strides = [1, 1]} : vector<8x32xf32> to vector<8x8xf32>
    %74 = arith.truncf %73 : vector<8x8xf32> to vector<8x8xbf16>
    %cst_25 = arith.constant dense<0.000000e+00> : vector<8x8xf32>
    %75 = tpu.matmul %70, %72, %cst_25 {dimension_numbers = #tpu.dot_dimension_numbers<[1], [1], [0], [0], [0, 0, 1, 0], [], []>} : vector<8x8xbf16>, vector<8x8xbf16>, vector<8x8xf32> -> vector<8x8xf32>
    %cst_26 = arith.constant 0.353553385 : f32
    %76 = vector.broadcast %cst_26 : f32 to vector<8x8xf32>
    %77 = arith.mulf %75, %76 : vector<8x8xf32>
    %cst_27 = arith.constant dense<0xFF800000> : vector<8xf32>
    %78 = vector.multi_reduction <maximumf>, %77, %cst_27 [1] : vector<8x8xf32> to vector<8xf32>
    %79 = vector.shape_cast %78 : vector<8xf32> to vector<8x1xf32>
    %80 = vector.broadcast %79 : vector<8x1xf32> to vector<8x8xf32>
    %81 = arith.subf %77, %80 : vector<8x8xf32>
    %82 = math.exp %81 : vector<8x8xf32>
    %cst_28 = arith.constant dense<0.000000e+00> : vector<8xf32>
    %83 = vector.multi_reduction <add>, %82, %cst_28 [1] : vector<8x8xf32> to vector<8xf32>
    %84 = vector.shape_cast %83 : vector<8xf32> to vector<8x1xf32>
    %85 = tpu.reciprocal %84 {approx = true} : vector<8x1xf32> -> vector<8x1xf32>
    %86 = vector.broadcast %85 : vector<8x1xf32> to vector<8x8xf32>
    %87 = arith.mulf %82, %86 : vector<8x8xf32>
    %88 = arith.truncf %87 : vector<8x8xf32> to vector<8x8xbf16>
    %cst_29 = arith.constant dense<0.000000e+00> : vector<8x8xf32>
    %89 = tpu.matmul %88, %74, %cst_29 {dimension_numbers = #tpu.dot_dimension_numbers<[1], [0], [0], [1], [0, 0, 1, 1], [], []>} : vector<8x8xbf16>, vector<8x8xbf16>, vector<8x8xf32> -> vector<8x8xf32>
    %90 = vector.extract_strided_slice %24 {offsets = [0, 24], sizes = [8, 8], strides = [1, 1]} : vector<8x32xf32> to vector<8x8xf32>
    %91 = arith.truncf %90 : vector<8x8xf32> to vector<8x8xbf16>
    %92 = vector.extract_strided_slice %25 {offsets = [0, 24], sizes = [8, 8], strides = [1, 1]} : vector<8x32xf32> to vector<8x8xf32>
    %93 = arith.truncf %92 : vector<8x8xf32> to vector<8x8xbf16>
    %94 = vector.extract_strided_slice %26 {offsets = [0, 24], sizes = [8, 8], strides = [1, 1]} : vector<8x32xf32> to vector<8x8xf32>
    %95 = arith.truncf %94 : vector<8x8xf32> to vector<8x8xbf16>
    %cst_30 = arith.constant dense<0.000000e+00> : vector<8x8xf32>
    %96 = tpu.matmul %91, %93, %cst_30 {dimension_numbers = #tpu.dot_dimension_numbers<[1], [1], [0], [0], [0, 0, 1, 0], [], []>} : vector<8x8xbf16>, vector<8x8xbf16>, vector<8x8xf32> -> vector<8x8xf32>
    %cst_31 = arith.constant 0.353553385 : f32
    %97 = vector.broadcast %cst_31 : f32 to vector<8x8xf32>
    %98 = arith.mulf %96, %97 : vector<8x8xf32>
    %cst_32 = arith.constant dense<0xFF800000> : vector<8xf32>
    %99 = vector.multi_reduction <maximumf>, %98, %cst_32 [1] : vector<8x8xf32> to vector<8xf32>
    %100 = vector.shape_cast %99 : vector<8xf32> to vector<8x1xf32>
    %101 = vector.broadcast %100 : vector<8x1xf32> to vector<8x8xf32>
    %102 = arith.subf %98, %101 : vector<8x8xf32>
    %103 = math.exp %102 : vector<8x8xf32>
    %cst_33 = arith.constant dense<0.000000e+00> : vector<8xf32>
    %104 = vector.multi_reduction <add>, %103, %cst_33 [1] : vector<8x8xf32> to vector<8xf32>
    %105 = vector.shape_cast %104 : vector<8xf32> to vector<8x1xf32>
    %106 = tpu.reciprocal %105 {approx = true} : vector<8x1xf32> -> vector<8x1xf32>
    %107 = vector.broadcast %106 : vector<8x1xf32> to vector<8x8xf32>
    %108 = arith.mulf %103, %107 : vector<8x8xf32>
    %109 = arith.truncf %108 : vector<8x8xf32> to vector<8x8xbf16>
    %cst_34 = arith.constant dense<0.000000e+00> : vector<8x8xf32>
    %110 = tpu.matmul %109, %95, %cst_34 {dimension_numbers = #tpu.dot_dimension_numbers<[1], [0], [0], [1], [0, 0, 1, 1], [], []>} : vector<8x8xbf16>, vector<8x8xbf16>, vector<8x8xf32> -> vector<8x8xf32>
    %111 = tpu.concatenate %47, %68, %89, %110 in 1 : vector<8x8xf32>, vector<8x8xf32>, vector<8x8xf32>, vector<8x8xf32> -> vector<8x32xf32>
    %112 = vector.extract_strided_slice %21 {offsets = [8, 0], sizes = [8, 32], strides = [1, 1]} : vector<16x32xf32> to vector<8x32xf32>
    %113 = vector.extract_strided_slice %22 {offsets = [8, 0], sizes = [8, 32], strides = [1, 1]} : vector<16x32xf32> to vector<8x32xf32>
    %114 = vector.extract_strided_slice %23 {offsets = [8, 0], sizes = [8, 32], strides = [1, 1]} : vector<16x32xf32> to vector<8x32xf32>
    %115 = vector.extract_strided_slice %112 {offsets = [0, 0], sizes = [8, 8], strides = [1, 1]} : vector<8x32xf32> to vector<8x8xf32>
    %116 = arith.truncf %115 : vector<8x8xf32> to vector<8x8xbf16>
    %117 = vector.extract_strided_slice %113 {offsets = [0, 0], sizes = [8, 8], strides = [1, 1]} : vector<8x32xf32> to vector<8x8xf32>
    %118 = arith.truncf %117 : vector<8x8xf32> to vector<8x8xbf16>
    %119 = vector.extract_strided_slice %114 {offsets = [0, 0], sizes = [8, 8], strides = [1, 1]} : vector<8x32xf32> to vector<8x8xf32>
    %120 = arith.truncf %119 : vector<8x8xf32> to vector<8x8xbf16>
    %cst_35 = arith.constant dense<0.000000e+00> : vector<8x8xf32>
    %121 = tpu.matmul %116, %118, %cst_35 {dimension_numbers = #tpu.dot_dimension_numbers<[1], [1], [0], [0], [0, 0, 1, 0], [], []>} : vector<8x8xbf16>, vector<8x8xbf16>, vector<8x8xf32> -> vector<8x8xf32>
    %cst_36 = arith.constant 0.353553385 : f32
    %122 = vector.broadcast %cst_36 : f32 to vector<8x8xf32>
    %123 = arith.mulf %121, %122 : vector<8x8xf32>
    %cst_37 = arith.constant dense<0xFF800000> : vector<8xf32>
    %124 = vector.multi_reduction <maximumf>, %123, %cst_37 [1] : vector<8x8xf32> to vector<8xf32>
    %125 = vector.shape_cast %124 : vector<8xf32> to vector<8x1xf32>
    %126 = vector.broadcast %125 : vector<8x1xf32> to vector<8x8xf32>
    %127 = arith.subf %123, %126 : vector<8x8xf32>
    %128 = math.exp %127 : vector<8x8xf32>
    %cst_38 = arith.constant dense<0.000000e+00> : vector<8xf32>
    %129 = vector.multi_reduction <add>, %128, %cst_38 [1] : vector<8x8xf32> to vector<8xf32>
    %130 = vector.shape_cast %129 : vector<8xf32> to vector<8x1xf32>
    %131 = tpu.reciprocal %130 {approx = true} : vector<8x1xf32> -> vector<8x1xf32>
    %132 = vector.broadcast %131 : vector<8x1xf32> to vector<8x8xf32>
    %133 = arith.mulf %128, %132 : vector<8x8xf32>
    %134 = arith.truncf %133 : vector<8x8xf32> to vector<8x8xbf16>
    %cst_39 = arith.constant dense<0.000000e+00> : vector<8x8xf32>
    %135 = tpu.matmul %134, %120, %cst_39 {dimension_numbers = #tpu.dot_dimension_numbers<[1], [0], [0], [1], [0, 0, 1, 1], [], []>} : vector<8x8xbf16>, vector<8x8xbf16>, vector<8x8xf32> -> vector<8x8xf32>
    %136 = vector.extract_strided_slice %112 {offsets = [0, 8], sizes = [8, 8], strides = [1, 1]} : vector<8x32xf32> to vector<8x8xf32>
    %137 = arith.truncf %136 : vector<8x8xf32> to vector<8x8xbf16>
    %138 = vector.extract_strided_slice %113 {offsets = [0, 8], sizes = [8, 8], strides = [1, 1]} : vector<8x32xf32> to vector<8x8xf32>
    %139 = arith.truncf %138 : vector<8x8xf32> to vector<8x8xbf16>
    %140 = vector.extract_strided_slice %114 {offsets = [0, 8], sizes = [8, 8], strides = [1, 1]} : vector<8x32xf32> to vector<8x8xf32>
    %141 = arith.truncf %140 : vector<8x8xf32> to vector<8x8xbf16>
    %cst_40 = arith.constant dense<0.000000e+00> : vector<8x8xf32>
    %142 = tpu.matmul %137, %139, %cst_40 {dimension_numbers = #tpu.dot_dimension_numbers<[1], [1], [0], [0], [0, 0, 1, 0], [], []>} : vector<8x8xbf16>, vector<8x8xbf16>, vector<8x8xf32> -> vector<8x8xf32>
    %cst_41 = arith.constant 0.353553385 : f32
    %143 = vector.broadcast %cst_41 : f32 to vector<8x8xf32>
    %144 = arith.mulf %142, %143 : vector<8x8xf32>
    %cst_42 = arith.constant dense<0xFF800000> : vector<8xf32>
    %145 = vector.multi_reduction <maximumf>, %144, %cst_42 [1] : vector<8x8xf32> to vector<8xf32>
    %146 = vector.shape_cast %145 : vector<8xf32> to vector<8x1xf32>
    %147 = vector.broadcast %146 : vector<8x1xf32> to vector<8x8xf32>
    %148 = arith.subf %144, %147 : vector<8x8xf32>
    %149 = math.exp %148 : vector<8x8xf32>
    %cst_43 = arith.constant dense<0.000000e+00> : vector<8xf32>
    %150 = vector.multi_reduction <add>, %149, %cst_43 [1] : vector<8x8xf32> to vector<8xf32>
    %151 = vector.shape_cast %150 : vector<8xf32> to vector<8x1xf32>
    %152 = tpu.reciprocal %151 {approx = true} : vector<8x1xf32> -> vector<8x1xf32>
    %153 = vector.broadcast %152 : vector<8x1xf32> to vector<8x8xf32>
    %154 = arith.mulf %149, %153 : vector<8x8xf32>
    %155 = arith.truncf %154 : vector<8x8xf32> to vector<8x8xbf16>
    %cst_44 = arith.constant dense<0.000000e+00> : vector<8x8xf32>
    %156 = tpu.matmul %155, %141, %cst_44 {dimension_numbers = #tpu.dot_dimension_numbers<[1], [0], [0], [1], [0, 0, 1, 1], [], []>} : vector<8x8xbf16>, vector<8x8xbf16>, vector<8x8xf32> -> vector<8x8xf32>
    %157 = vector.extract_strided_slice %112 {offsets = [0, 16], sizes = [8, 8], strides = [1, 1]} : vector<8x32xf32> to vector<8x8xf32>
    %158 = arith.truncf %157 : vector<8x8xf32> to vector<8x8xbf16>
    %159 = vector.extract_strided_slice %113 {offsets = [0, 16], sizes = [8, 8], strides = [1, 1]} : vector<8x32xf32> to vector<8x8xf32>
    %160 = arith.truncf %159 : vector<8x8xf32> to vector<8x8xbf16>
    %161 = vector.extract_strided_slice %114 {offsets = [0, 16], sizes = [8, 8], strides = [1, 1]} : vector<8x32xf32> to vector<8x8xf32>
    %162 = arith.truncf %161 : vector<8x8xf32> to vector<8x8xbf16>
    %cst_45 = arith.constant dense<0.000000e+00> : vector<8x8xf32>
    %163 = tpu.matmul %158, %160, %cst_45 {dimension_numbers = #tpu.dot_dimension_numbers<[1], [1], [0], [0], [0, 0, 1, 0], [], []>} : vector<8x8xbf16>, vector<8x8xbf16>, vector<8x8xf32> -> vector<8x8xf32>
    %cst_46 = arith.constant 0.353553385 : f32
    %164 = vector.broadcast %cst_46 : f32 to vector<8x8xf32>
    %165 = arith.mulf %163, %164 : vector<8x8xf32>
    %cst_47 = arith.constant dense<0xFF800000> : vector<8xf32>
    %166 = vector.multi_reduction <maximumf>, %165, %cst_47 [1] : vector<8x8xf32> to vector<8xf32>
    %167 = vector.shape_cast %166 : vector<8xf32> to vector<8x1xf32>
    %168 = vector.broadcast %167 : vector<8x1xf32> to vector<8x8xf32>
    %169 = arith.subf %165, %168 : vector<8x8xf32>
    %170 = math.exp %169 : vector<8x8xf32>
    %cst_48 = arith.constant dense<0.000000e+00> : vector<8xf32>
    %171 = vector.multi_reduction <add>, %170, %cst_48 [1] : vector<8x8xf32> to vector<8xf32>
    %172 = vector.shape_cast %171 : vector<8xf32> to vector<8x1xf32>
    %173 = tpu.reciprocal %172 {approx = true} : vector<8x1xf32> -> vector<8x1xf32>
    %174 = vector.broadcast %173 : vector<8x1xf32> to vector<8x8xf32>
    %175 = arith.mulf %170, %174 : vector<8x8xf32>
    %176 = arith.truncf %175 : vector<8x8xf32> to vector<8x8xbf16>
    %cst_49 = arith.constant dense<0.000000e+00> : vector<8x8xf32>
    %177 = tpu.matmul %176, %162, %cst_49 {dimension_numbers = #tpu.dot_dimension_numbers<[1], [0], [0], [1], [0, 0, 1, 1], [], []>} : vector<8x8xbf16>, vector<8x8xbf16>, vector<8x8xf32> -> vector<8x8xf32>
    %178 = vector.extract_strided_slice %112 {offsets = [0, 24], sizes = [8, 8], strides = [1, 1]} : vector<8x32xf32> to vector<8x8xf32>
    %179 = arith.truncf %178 : vector<8x8xf32> to vector<8x8xbf16>
    %180 = vector.extract_strided_slice %113 {offsets = [0, 24], sizes = [8, 8], strides = [1, 1]} : vector<8x32xf32> to vector<8x8xf32>
    %181 = arith.truncf %180 : vector<8x8xf32> to vector<8x8xbf16>
    %182 = vector.extract_strided_slice %114 {offsets = [0, 24], sizes = [8, 8], strides = [1, 1]} : vector<8x32xf32> to vector<8x8xf32>
    %183 = arith.truncf %182 : vector<8x8xf32> to vector<8x8xbf16>
    %cst_50 = arith.constant dense<0.000000e+00> : vector<8x8xf32>
    %184 = tpu.matmul %179, %181, %cst_50 {dimension_numbers = #tpu.dot_dimension_numbers<[1], [1], [0], [0], [0, 0, 1, 0], [], []>} : vector<8x8xbf16>, vector<8x8xbf16>, vector<8x8xf32> -> vector<8x8xf32>
    %cst_51 = arith.constant 0.353553385 : f32
    %185 = vector.broadcast %cst_51 : f32 to vector<8x8xf32>
    %186 = arith.mulf %184, %185 : vector<8x8xf32>
    %cst_52 = arith.constant dense<0xFF800000> : vector<8xf32>
    %187 = vector.multi_reduction <maximumf>, %186, %cst_52 [1] : vector<8x8xf32> to vector<8xf32>
    %188 = vector.shape_cast %187 : vector<8xf32> to vector<8x1xf32>
    %189 = vector.broadcast %188 : vector<8x1xf32> to vector<8x8xf32>
    %190 = arith.subf %186, %189 : vector<8x8xf32>
    %191 = math.exp %190 : vector<8x8xf32>
    %cst_53 = arith.constant dense<0.000000e+00> : vector<8xf32>
    %192 = vector.multi_reduction <add>, %191, %cst_53 [1] : vector<8x8xf32> to vector<8xf32>
    %193 = vector.shape_cast %192 : vector<8xf32> to vector<8x1xf32>
    %194 = tpu.reciprocal %193 {approx = true} : vector<8x1xf32> -> vector<8x1xf32>
    %195 = vector.broadcast %194 : vector<8x1xf32> to vector<8x8xf32>
    %196 = arith.mulf %191, %195 : vector<8x8xf32>
    %197 = arith.truncf %196 : vector<8x8xf32> to vector<8x8xbf16>
    %cst_54 = arith.constant dense<0.000000e+00> : vector<8x8xf32>
    %198 = tpu.matmul %197, %183, %cst_54 {dimension_numbers = #tpu.dot_dimension_numbers<[1], [0], [0], [1], [0, 0, 1, 1], [], []>} : vector<8x8xbf16>, vector<8x8xbf16>, vector<8x8xf32> -> vector<8x8xf32>
    %199 = tpu.concatenate %135, %156, %177, %198 in 1 : vector<8x8xf32>, vector<8x8xf32>, vector<8x8xf32>, vector<8x8xf32> -> vector<8x32xf32>
    %200 = tpu.concatenate %111, %199 in 0 : vector<8x32xf32>, vector<8x32xf32> -> vector<16x32xf32>
    %201 = arith.truncf %200 : vector<16x32xf32> to vector<16x32xbf16>
    %c0_55 = arith.constant 0 : index
    %c0_56 = arith.constant 0 : index
    %c0_57 = arith.constant 0 : index
    %202 = vector.load %arg6[%c0_55, %c0_56, %c0_57] : memref<2x32x32xbf16, #tpu.memory_space<vmem>>, vector<1x32x32xbf16>
    %203 = vector.shape_cast %202 : vector<1x32x32xbf16> to vector<32x32xbf16>
    %cst_58 = arith.constant dense<0.000000e+00> : vector<16x32xf32>
    %204 = tpu.matmul %201, %203, %cst_58 {dimension_numbers = #tpu.dot_dimension_numbers<[1], [0], [0], [1], [0, 0, 1, 1], [], []>} : vector<16x32xbf16>, vector<32x32xbf16>, vector<16x32xf32> -> vector<16x32xf32>
    %205 = vector.broadcast %7 : vector<1x32xf32> to vector<16x32xf32>
    %206 = arith.addf %204, %205 : vector<16x32xf32>
    %207 = arith.addf %4, %206 : vector<16x32xf32>
    %cst_59 = arith.constant dense<0.000000e+00> : vector<16xf32>
    %208 = vector.multi_reduction <add>, %207, %cst_59 [1] : vector<16x32xf32> to vector<16xf32>
    %209 = vector.shape_cast %208 : vector<16xf32> to vector<16x1xf32>
    %cst_60 = arith.constant 3.200000e+01 : f32
    %210 = vector.broadcast %cst_60 : f32 to vector<16x1xf32>
    %211 = arith.divf %209, %210 : vector<16x1xf32>
    %212 = vector.broadcast %211 : vector<16x1xf32> to vector<16x32xf32>
    %213 = arith.subf %207, %212 : vector<16x32xf32>
    %214 = arith.mulf %213, %213 : vector<16x32xf32>
    %cst_61 = arith.constant dense<0.000000e+00> : vector<16xf32>
    %215 = vector.multi_reduction <add>, %214, %cst_61 [1] : vector<16x32xf32> to vector<16xf32>
    %216 = vector.shape_cast %215 : vector<16xf32> to vector<16x1xf32>
    %cst_62 = arith.constant 3.200000e+01 : f32
    %217 = vector.broadcast %cst_62 : f32 to vector<16x1xf32>
    %218 = arith.divf %216, %217 : vector<16x1xf32>
    %219 = vector.broadcast %211 : vector<16x1xf32> to vector<16x32xf32>
    %220 = arith.subf %207, %219 : vector<16x32xf32>
    %cst_63 = arith.constant 9.99999974E-6 : f32
    %221 = vector.broadcast %cst_63 : f32 to vector<16x1xf32>
    %222 = arith.addf %218, %221 : vector<16x1xf32>
    %223 = math.rsqrt %222 : vector<16x1xf32>
    %224 = vector.broadcast %223 : vector<16x1xf32> to vector<16x32xf32>
    %225 = arith.mulf %220, %224 : vector<16x32xf32>
    %226 = vector.broadcast %9 : vector<1x32xf32> to vector<16x32xf32>
    %227 = arith.mulf %225, %226 : vector<16x32xf32>
    %228 = vector.broadcast %10 : vector<1x32xf32> to vector<16x32xf32>
    %229 = arith.addf %227, %228 : vector<16x32xf32>
    %230 = arith.truncf %229 : vector<16x32xf32> to vector<16x32xbf16>
    %c0_64 = arith.constant 0 : index
    %c0_65 = arith.constant 0 : index
    %c0_66 = arith.constant 0 : index
    %231 = vector.load %arg7[%c0_64, %c0_65, %c0_66] : memref<2x32x64xbf16, #tpu.memory_space<vmem>>, vector<1x32x64xbf16>
    %232 = vector.shape_cast %231 : vector<1x32x64xbf16> to vector<32x64xbf16>
    %cst_67 = arith.constant dense<0.000000e+00> : vector<16x64xf32>
    %233 = tpu.matmul %230, %232, %cst_67 {dimension_numbers = #tpu.dot_dimension_numbers<[1], [0], [0], [1], [0, 0, 1, 1], [], []>} : vector<16x32xbf16>, vector<32x64xbf16>, vector<16x64xf32> -> vector<16x64xf32>
    %c0_68 = arith.constant 0 : index
    %c0_69 = arith.constant 0 : index
    %c0_70 = arith.constant 0 : index
    %234 = vector.load %arg8[%c0_68, %c0_69, %c0_70] : memref<2x1x64xf32, #tpu.memory_space<vmem>>, vector<1x1x64xf32>
    %235 = vector.shape_cast %234 : vector<1x1x64xf32> to vector<1x64xf32>
    %236 = vector.broadcast %235 : vector<1x64xf32> to vector<16x64xf32>
    %237 = arith.addf %233, %236 : vector<16x64xf32>
    %cst_71 = arith.constant 0.000000e+00 : f32
    %238 = vector.broadcast %cst_71 : f32 to vector<16x64xf32>
    %239 = arith.maximumf %237, %238 : vector<16x64xf32>
    %240 = arith.truncf %239 : vector<16x64xf32> to vector<16x64xbf16>
    %c0_72 = arith.constant 0 : index
    %c0_73 = arith.constant 0 : index
    %c0_74 = arith.constant 0 : index
    %241 = vector.load %arg9[%c0_72, %c0_73, %c0_74] : memref<2x64x32xbf16, #tpu.memory_space<vmem>>, vector<1x64x32xbf16>
    %242 = vector.shape_cast %241 : vector<1x64x32xbf16> to vector<64x32xbf16>
    %cst_75 = arith.constant dense<0.000000e+00> : vector<16x32xf32>
    %243 = tpu.matmul %240, %242, %cst_75 {dimension_numbers = #tpu.dot_dimension_numbers<[1], [0], [0], [1], [0, 0, 1, 1], [], []>} : vector<16x64xbf16>, vector<64x32xbf16>, vector<16x32xf32> -> vector<16x32xf32>
    %244 = vector.broadcast %8 : vector<1x32xf32> to vector<16x32xf32>
    %245 = arith.addf %243, %244 : vector<16x32xf32>
    %246 = arith.addf %229, %245 : vector<16x32xf32>
    %cst_76 = arith.constant dense<0.000000e+00> : vector<16xf32>
    %247 = vector.multi_reduction <add>, %246, %cst_76 [1] : vector<16x32xf32> to vector<16xf32>
    %248 = vector.shape_cast %247 : vector<16xf32> to vector<16x1xf32>
    %cst_77 = arith.constant 3.200000e+01 : f32
    %249 = vector.broadcast %cst_77 : f32 to vector<16x1xf32>
    %250 = arith.divf %248, %249 : vector<16x1xf32>
    %251 = vector.broadcast %250 : vector<16x1xf32> to vector<16x32xf32>
    %252 = arith.subf %246, %251 : vector<16x32xf32>
    %253 = arith.mulf %252, %252 : vector<16x32xf32>
    %cst_78 = arith.constant dense<0.000000e+00> : vector<16xf32>
    %254 = vector.multi_reduction <add>, %253, %cst_78 [1] : vector<16x32xf32> to vector<16xf32>
    %255 = vector.shape_cast %254 : vector<16xf32> to vector<16x1xf32>
    %cst_79 = arith.constant 3.200000e+01 : f32
    %256 = vector.broadcast %cst_79 : f32 to vector<16x1xf32>
    %257 = arith.divf %255, %256 : vector<16x1xf32>
    %258 = vector.broadcast %250 : vector<16x1xf32> to vector<16x32xf32>
    %259 = arith.subf %246, %258 : vector<16x32xf32>
    %cst_80 = arith.constant 9.99999974E-6 : f32
    %260 = vector.broadcast %cst_80 : f32 to vector<16x1xf32>
    %261 = arith.addf %257, %260 : vector<16x1xf32>
    %262 = math.rsqrt %261 : vector<16x1xf32>
    %263 = vector.broadcast %262 : vector<16x1xf32> to vector<16x32xf32>
    %264 = arith.mulf %259, %263 : vector<16x32xf32>
    %265 = vector.broadcast %11 : vector<1x32xf32> to vector<16x32xf32>
    %266 = arith.mulf %264, %265 : vector<16x32xf32>
    %267 = vector.broadcast %12 : vector<1x32xf32> to vector<16x32xf32>
    %268 = arith.addf %266, %267 : vector<16x32xf32>
    %c1 = arith.constant 1 : index
    %c0_81 = arith.constant 0 : index
    %c0_82 = arith.constant 0 : index
    %269 = vector.load %arg10[%c1, %c0_81, %c0_82] : memref<2x6x32xf32, #tpu.memory_space<vmem>>, vector<1x6x32xf32>
    %270 = vector.shape_cast %269 : vector<1x6x32xf32> to vector<6x32xf32>
    %271 = vector.extract_strided_slice %270 {offsets = [0, 0], sizes = [1, 32], strides = [1, 1]} : vector<6x32xf32> to vector<1x32xf32>
    %272 = vector.extract_strided_slice %270 {offsets = [1, 0], sizes = [1, 32], strides = [1, 1]} : vector<6x32xf32> to vector<1x32xf32>
    %273 = vector.extract_strided_slice %270 {offsets = [2, 0], sizes = [1, 32], strides = [1, 1]} : vector<6x32xf32> to vector<1x32xf32>
    %274 = vector.extract_strided_slice %270 {offsets = [3, 0], sizes = [1, 32], strides = [1, 1]} : vector<6x32xf32> to vector<1x32xf32>
    %275 = vector.extract_strided_slice %270 {offsets = [4, 0], sizes = [1, 32], strides = [1, 1]} : vector<6x32xf32> to vector<1x32xf32>
    %276 = vector.extract_strided_slice %270 {offsets = [5, 0], sizes = [1, 32], strides = [1, 1]} : vector<6x32xf32> to vector<1x32xf32>
    %277 = arith.truncf %268 : vector<16x32xf32> to vector<16x32xbf16>
    %c1_83 = arith.constant 1 : index
    %c0_84 = arith.constant 0 : index
    %c0_85 = arith.constant 0 : index
    %278 = vector.load %arg4[%c1_83, %c0_84, %c0_85] : memref<2x32x96xbf16, #tpu.memory_space<vmem>>, vector<1x32x96xbf16>
    %279 = vector.shape_cast %278 : vector<1x32x96xbf16> to vector<32x96xbf16>
    %cst_86 = arith.constant dense<0.000000e+00> : vector<16x96xf32>
    %280 = tpu.matmul %277, %279, %cst_86 {dimension_numbers = #tpu.dot_dimension_numbers<[1], [0], [0], [1], [0, 0, 1, 1], [], []>} : vector<16x32xbf16>, vector<32x96xbf16>, vector<16x96xf32> -> vector<16x96xf32>
    %c1_87 = arith.constant 1 : index
    %c0_88 = arith.constant 0 : index
    %c0_89 = arith.constant 0 : index
    %281 = vector.load %arg5[%c1_87, %c0_88, %c0_89] : memref<2x1x96xf32, #tpu.memory_space<vmem>>, vector<1x1x96xf32>
    %282 = vector.shape_cast %281 : vector<1x1x96xf32> to vector<1x96xf32>
    %283 = vector.broadcast %282 : vector<1x96xf32> to vector<16x96xf32>
    %284 = arith.addf %280, %283 : vector<16x96xf32>
    %285 = vector.extract_strided_slice %284 {offsets = [0, 0], sizes = [16, 32], strides = [1, 1]} : vector<16x96xf32> to vector<16x32xf32>
    %286 = vector.extract_strided_slice %284 {offsets = [0, 32], sizes = [16, 32], strides = [1, 1]} : vector<16x96xf32> to vector<16x32xf32>
    %287 = vector.extract_strided_slice %284 {offsets = [0, 64], sizes = [16, 32], strides = [1, 1]} : vector<16x96xf32> to vector<16x32xf32>
    %288 = vector.extract_strided_slice %285 {offsets = [0, 0], sizes = [8, 32], strides = [1, 1]} : vector<16x32xf32> to vector<8x32xf32>
    %289 = vector.extract_strided_slice %286 {offsets = [0, 0], sizes = [8, 32], strides = [1, 1]} : vector<16x32xf32> to vector<8x32xf32>
    %290 = vector.extract_strided_slice %287 {offsets = [0, 0], sizes = [8, 32], strides = [1, 1]} : vector<16x32xf32> to vector<8x32xf32>
    %291 = vector.extract_strided_slice %288 {offsets = [0, 0], sizes = [8, 8], strides = [1, 1]} : vector<8x32xf32> to vector<8x8xf32>
    %292 = arith.truncf %291 : vector<8x8xf32> to vector<8x8xbf16>
    %293 = vector.extract_strided_slice %289 {offsets = [0, 0], sizes = [8, 8], strides = [1, 1]} : vector<8x32xf32> to vector<8x8xf32>
    %294 = arith.truncf %293 : vector<8x8xf32> to vector<8x8xbf16>
    %295 = vector.extract_strided_slice %290 {offsets = [0, 0], sizes = [8, 8], strides = [1, 1]} : vector<8x32xf32> to vector<8x8xf32>
    %296 = arith.truncf %295 : vector<8x8xf32> to vector<8x8xbf16>
    %cst_90 = arith.constant dense<0.000000e+00> : vector<8x8xf32>
    %297 = tpu.matmul %292, %294, %cst_90 {dimension_numbers = #tpu.dot_dimension_numbers<[1], [1], [0], [0], [0, 0, 1, 0], [], []>} : vector<8x8xbf16>, vector<8x8xbf16>, vector<8x8xf32> -> vector<8x8xf32>
    %cst_91 = arith.constant 0.353553385 : f32
    %298 = vector.broadcast %cst_91 : f32 to vector<8x8xf32>
    %299 = arith.mulf %297, %298 : vector<8x8xf32>
    %cst_92 = arith.constant dense<0xFF800000> : vector<8xf32>
    %300 = vector.multi_reduction <maximumf>, %299, %cst_92 [1] : vector<8x8xf32> to vector<8xf32>
    %301 = vector.shape_cast %300 : vector<8xf32> to vector<8x1xf32>
    %302 = vector.broadcast %301 : vector<8x1xf32> to vector<8x8xf32>
    %303 = arith.subf %299, %302 : vector<8x8xf32>
    %304 = math.exp %303 : vector<8x8xf32>
    %cst_93 = arith.constant dense<0.000000e+00> : vector<8xf32>
    %305 = vector.multi_reduction <add>, %304, %cst_93 [1] : vector<8x8xf32> to vector<8xf32>
    %306 = vector.shape_cast %305 : vector<8xf32> to vector<8x1xf32>
    %307 = tpu.reciprocal %306 {approx = true} : vector<8x1xf32> -> vector<8x1xf32>
    %308 = vector.broadcast %307 : vector<8x1xf32> to vector<8x8xf32>
    %309 = arith.mulf %304, %308 : vector<8x8xf32>
    %310 = arith.truncf %309 : vector<8x8xf32> to vector<8x8xbf16>
    %cst_94 = arith.constant dense<0.000000e+00> : vector<8x8xf32>
    %311 = tpu.matmul %310, %296, %cst_94 {dimension_numbers = #tpu.dot_dimension_numbers<[1], [0], [0], [1], [0, 0, 1, 1], [], []>} : vector<8x8xbf16>, vector<8x8xbf16>, vector<8x8xf32> -> vector<8x8xf32>
    %312 = vector.extract_strided_slice %288 {offsets = [0, 8], sizes = [8, 8], strides = [1, 1]} : vector<8x32xf32> to vector<8x8xf32>
    %313 = arith.truncf %312 : vector<8x8xf32> to vector<8x8xbf16>
    %314 = vector.extract_strided_slice %289 {offsets = [0, 8], sizes = [8, 8], strides = [1, 1]} : vector<8x32xf32> to vector<8x8xf32>
    %315 = arith.truncf %314 : vector<8x8xf32> to vector<8x8xbf16>
    %316 = vector.extract_strided_slice %290 {offsets = [0, 8], sizes = [8, 8], strides = [1, 1]} : vector<8x32xf32> to vector<8x8xf32>
    %317 = arith.truncf %316 : vector<8x8xf32> to vector<8x8xbf16>
    %cst_95 = arith.constant dense<0.000000e+00> : vector<8x8xf32>
    %318 = tpu.matmul %313, %315, %cst_95 {dimension_numbers = #tpu.dot_dimension_numbers<[1], [1], [0], [0], [0, 0, 1, 0], [], []>} : vector<8x8xbf16>, vector<8x8xbf16>, vector<8x8xf32> -> vector<8x8xf32>
    %cst_96 = arith.constant 0.353553385 : f32
    %319 = vector.broadcast %cst_96 : f32 to vector<8x8xf32>
    %320 = arith.mulf %318, %319 : vector<8x8xf32>
    %cst_97 = arith.constant dense<0xFF800000> : vector<8xf32>
    %321 = vector.multi_reduction <maximumf>, %320, %cst_97 [1] : vector<8x8xf32> to vector<8xf32>
    %322 = vector.shape_cast %321 : vector<8xf32> to vector<8x1xf32>
    %323 = vector.broadcast %322 : vector<8x1xf32> to vector<8x8xf32>
    %324 = arith.subf %320, %323 : vector<8x8xf32>
    %325 = math.exp %324 : vector<8x8xf32>
    %cst_98 = arith.constant dense<0.000000e+00> : vector<8xf32>
    %326 = vector.multi_reduction <add>, %325, %cst_98 [1] : vector<8x8xf32> to vector<8xf32>
    %327 = vector.shape_cast %326 : vector<8xf32> to vector<8x1xf32>
    %328 = tpu.reciprocal %327 {approx = true} : vector<8x1xf32> -> vector<8x1xf32>
    %329 = vector.broadcast %328 : vector<8x1xf32> to vector<8x8xf32>
    %330 = arith.mulf %325, %329 : vector<8x8xf32>
    %331 = arith.truncf %330 : vector<8x8xf32> to vector<8x8xbf16>
    %cst_99 = arith.constant dense<0.000000e+00> : vector<8x8xf32>
    %332 = tpu.matmul %331, %317, %cst_99 {dimension_numbers = #tpu.dot_dimension_numbers<[1], [0], [0], [1], [0, 0, 1, 1], [], []>} : vector<8x8xbf16>, vector<8x8xbf16>, vector<8x8xf32> -> vector<8x8xf32>
    %333 = vector.extract_strided_slice %288 {offsets = [0, 16], sizes = [8, 8], strides = [1, 1]} : vector<8x32xf32> to vector<8x8xf32>
    %334 = arith.truncf %333 : vector<8x8xf32> to vector<8x8xbf16>
    %335 = vector.extract_strided_slice %289 {offsets = [0, 16], sizes = [8, 8], strides = [1, 1]} : vector<8x32xf32> to vector<8x8xf32>
    %336 = arith.truncf %335 : vector<8x8xf32> to vector<8x8xbf16>
    %337 = vector.extract_strided_slice %290 {offsets = [0, 16], sizes = [8, 8], strides = [1, 1]} : vector<8x32xf32> to vector<8x8xf32>
    %338 = arith.truncf %337 : vector<8x8xf32> to vector<8x8xbf16>
    %cst_100 = arith.constant dense<0.000000e+00> : vector<8x8xf32>
    %339 = tpu.matmul %334, %336, %cst_100 {dimension_numbers = #tpu.dot_dimension_numbers<[1], [1], [0], [0], [0, 0, 1, 0], [], []>} : vector<8x8xbf16>, vector<8x8xbf16>, vector<8x8xf32> -> vector<8x8xf32>
    %cst_101 = arith.constant 0.353553385 : f32
    %340 = vector.broadcast %cst_101 : f32 to vector<8x8xf32>
    %341 = arith.mulf %339, %340 : vector<8x8xf32>
    %cst_102 = arith.constant dense<0xFF800000> : vector<8xf32>
    %342 = vector.multi_reduction <maximumf>, %341, %cst_102 [1] : vector<8x8xf32> to vector<8xf32>
    %343 = vector.shape_cast %342 : vector<8xf32> to vector<8x1xf32>
    %344 = vector.broadcast %343 : vector<8x1xf32> to vector<8x8xf32>
    %345 = arith.subf %341, %344 : vector<8x8xf32>
    %346 = math.exp %345 : vector<8x8xf32>
    %cst_103 = arith.constant dense<0.000000e+00> : vector<8xf32>
    %347 = vector.multi_reduction <add>, %346, %cst_103 [1] : vector<8x8xf32> to vector<8xf32>
    %348 = vector.shape_cast %347 : vector<8xf32> to vector<8x1xf32>
    %349 = tpu.reciprocal %348 {approx = true} : vector<8x1xf32> -> vector<8x1xf32>
    %350 = vector.broadcast %349 : vector<8x1xf32> to vector<8x8xf32>
    %351 = arith.mulf %346, %350 : vector<8x8xf32>
    %352 = arith.truncf %351 : vector<8x8xf32> to vector<8x8xbf16>
    %cst_104 = arith.constant dense<0.000000e+00> : vector<8x8xf32>
    %353 = tpu.matmul %352, %338, %cst_104 {dimension_numbers = #tpu.dot_dimension_numbers<[1], [0], [0], [1], [0, 0, 1, 1], [], []>} : vector<8x8xbf16>, vector<8x8xbf16>, vector<8x8xf32> -> vector<8x8xf32>
    %354 = vector.extract_strided_slice %288 {offsets = [0, 24], sizes = [8, 8], strides = [1, 1]} : vector<8x32xf32> to vector<8x8xf32>
    %355 = arith.truncf %354 : vector<8x8xf32> to vector<8x8xbf16>
    %356 = vector.extract_strided_slice %289 {offsets = [0, 24], sizes = [8, 8], strides = [1, 1]} : vector<8x32xf32> to vector<8x8xf32>
    %357 = arith.truncf %356 : vector<8x8xf32> to vector<8x8xbf16>
    %358 = vector.extract_strided_slice %290 {offsets = [0, 24], sizes = [8, 8], strides = [1, 1]} : vector<8x32xf32> to vector<8x8xf32>
    %359 = arith.truncf %358 : vector<8x8xf32> to vector<8x8xbf16>
    %cst_105 = arith.constant dense<0.000000e+00> : vector<8x8xf32>
    %360 = tpu.matmul %355, %357, %cst_105 {dimension_numbers = #tpu.dot_dimension_numbers<[1], [1], [0], [0], [0, 0, 1, 0], [], []>} : vector<8x8xbf16>, vector<8x8xbf16>, vector<8x8xf32> -> vector<8x8xf32>
    %cst_106 = arith.constant 0.353553385 : f32
    %361 = vector.broadcast %cst_106 : f32 to vector<8x8xf32>
    %362 = arith.mulf %360, %361 : vector<8x8xf32>
    %cst_107 = arith.constant dense<0xFF800000> : vector<8xf32>
    %363 = vector.multi_reduction <maximumf>, %362, %cst_107 [1] : vector<8x8xf32> to vector<8xf32>
    %364 = vector.shape_cast %363 : vector<8xf32> to vector<8x1xf32>
    %365 = vector.broadcast %364 : vector<8x1xf32> to vector<8x8xf32>
    %366 = arith.subf %362, %365 : vector<8x8xf32>
    %367 = math.exp %366 : vector<8x8xf32>
    %cst_108 = arith.constant dense<0.000000e+00> : vector<8xf32>
    %368 = vector.multi_reduction <add>, %367, %cst_108 [1] : vector<8x8xf32> to vector<8xf32>
    %369 = vector.shape_cast %368 : vector<8xf32> to vector<8x1xf32>
    %370 = tpu.reciprocal %369 {approx = true} : vector<8x1xf32> -> vector<8x1xf32>
    %371 = vector.broadcast %370 : vector<8x1xf32> to vector<8x8xf32>
    %372 = arith.mulf %367, %371 : vector<8x8xf32>
    %373 = arith.truncf %372 : vector<8x8xf32> to vector<8x8xbf16>
    %cst_109 = arith.constant dense<0.000000e+00> : vector<8x8xf32>
    %374 = tpu.matmul %373, %359, %cst_109 {dimension_numbers = #tpu.dot_dimension_numbers<[1], [0], [0], [1], [0, 0, 1, 1], [], []>} : vector<8x8xbf16>, vector<8x8xbf16>, vector<8x8xf32> -> vector<8x8xf32>
    %375 = tpu.concatenate %311, %332, %353, %374 in 1 : vector<8x8xf32>, vector<8x8xf32>, vector<8x8xf32>, vector<8x8xf32> -> vector<8x32xf32>
    %376 = vector.extract_strided_slice %285 {offsets = [8, 0], sizes = [8, 32], strides = [1, 1]} : vector<16x32xf32> to vector<8x32xf32>
    %377 = vector.extract_strided_slice %286 {offsets = [8, 0], sizes = [8, 32], strides = [1, 1]} : vector<16x32xf32> to vector<8x32xf32>
    %378 = vector.extract_strided_slice %287 {offsets = [8, 0], sizes = [8, 32], strides = [1, 1]} : vector<16x32xf32> to vector<8x32xf32>
    %379 = vector.extract_strided_slice %376 {offsets = [0, 0], sizes = [8, 8], strides = [1, 1]} : vector<8x32xf32> to vector<8x8xf32>
    %380 = arith.truncf %379 : vector<8x8xf32> to vector<8x8xbf16>
    %381 = vector.extract_strided_slice %377 {offsets = [0, 0], sizes = [8, 8], strides = [1, 1]} : vector<8x32xf32> to vector<8x8xf32>
    %382 = arith.truncf %381 : vector<8x8xf32> to vector<8x8xbf16>
    %383 = vector.extract_strided_slice %378 {offsets = [0, 0], sizes = [8, 8], strides = [1, 1]} : vector<8x32xf32> to vector<8x8xf32>
    %384 = arith.truncf %383 : vector<8x8xf32> to vector<8x8xbf16>
    %cst_110 = arith.constant dense<0.000000e+00> : vector<8x8xf32>
    %385 = tpu.matmul %380, %382, %cst_110 {dimension_numbers = #tpu.dot_dimension_numbers<[1], [1], [0], [0], [0, 0, 1, 0], [], []>} : vector<8x8xbf16>, vector<8x8xbf16>, vector<8x8xf32> -> vector<8x8xf32>
    %cst_111 = arith.constant 0.353553385 : f32
    %386 = vector.broadcast %cst_111 : f32 to vector<8x8xf32>
    %387 = arith.mulf %385, %386 : vector<8x8xf32>
    %cst_112 = arith.constant dense<0xFF800000> : vector<8xf32>
    %388 = vector.multi_reduction <maximumf>, %387, %cst_112 [1] : vector<8x8xf32> to vector<8xf32>
    %389 = vector.shape_cast %388 : vector<8xf32> to vector<8x1xf32>
    %390 = vector.broadcast %389 : vector<8x1xf32> to vector<8x8xf32>
    %391 = arith.subf %387, %390 : vector<8x8xf32>
    %392 = math.exp %391 : vector<8x8xf32>
    %cst_113 = arith.constant dense<0.000000e+00> : vector<8xf32>
    %393 = vector.multi_reduction <add>, %392, %cst_113 [1] : vector<8x8xf32> to vector<8xf32>
    %394 = vector.shape_cast %393 : vector<8xf32> to vector<8x1xf32>
    %395 = tpu.reciprocal %394 {approx = true} : vector<8x1xf32> -> vector<8x1xf32>
    %396 = vector.broadcast %395 : vector<8x1xf32> to vector<8x8xf32>
    %397 = arith.mulf %392, %396 : vector<8x8xf32>
    %398 = arith.truncf %397 : vector<8x8xf32> to vector<8x8xbf16>
    %cst_114 = arith.constant dense<0.000000e+00> : vector<8x8xf32>
    %399 = tpu.matmul %398, %384, %cst_114 {dimension_numbers = #tpu.dot_dimension_numbers<[1], [0], [0], [1], [0, 0, 1, 1], [], []>} : vector<8x8xbf16>, vector<8x8xbf16>, vector<8x8xf32> -> vector<8x8xf32>
    %400 = vector.extract_strided_slice %376 {offsets = [0, 8], sizes = [8, 8], strides = [1, 1]} : vector<8x32xf32> to vector<8x8xf32>
    %401 = arith.truncf %400 : vector<8x8xf32> to vector<8x8xbf16>
    %402 = vector.extract_strided_slice %377 {offsets = [0, 8], sizes = [8, 8], strides = [1, 1]} : vector<8x32xf32> to vector<8x8xf32>
    %403 = arith.truncf %402 : vector<8x8xf32> to vector<8x8xbf16>
    %404 = vector.extract_strided_slice %378 {offsets = [0, 8], sizes = [8, 8], strides = [1, 1]} : vector<8x32xf32> to vector<8x8xf32>
    %405 = arith.truncf %404 : vector<8x8xf32> to vector<8x8xbf16>
    %cst_115 = arith.constant dense<0.000000e+00> : vector<8x8xf32>
    %406 = tpu.matmul %401, %403, %cst_115 {dimension_numbers = #tpu.dot_dimension_numbers<[1], [1], [0], [0], [0, 0, 1, 0], [], []>} : vector<8x8xbf16>, vector<8x8xbf16>, vector<8x8xf32> -> vector<8x8xf32>
    %cst_116 = arith.constant 0.353553385 : f32
    %407 = vector.broadcast %cst_116 : f32 to vector<8x8xf32>
    %408 = arith.mulf %406, %407 : vector<8x8xf32>
    %cst_117 = arith.constant dense<0xFF800000> : vector<8xf32>
    %409 = vector.multi_reduction <maximumf>, %408, %cst_117 [1] : vector<8x8xf32> to vector<8xf32>
    %410 = vector.shape_cast %409 : vector<8xf32> to vector<8x1xf32>
    %411 = vector.broadcast %410 : vector<8x1xf32> to vector<8x8xf32>
    %412 = arith.subf %408, %411 : vector<8x8xf32>
    %413 = math.exp %412 : vector<8x8xf32>
    %cst_118 = arith.constant dense<0.000000e+00> : vector<8xf32>
    %414 = vector.multi_reduction <add>, %413, %cst_118 [1] : vector<8x8xf32> to vector<8xf32>
    %415 = vector.shape_cast %414 : vector<8xf32> to vector<8x1xf32>
    %416 = tpu.reciprocal %415 {approx = true} : vector<8x1xf32> -> vector<8x1xf32>
    %417 = vector.broadcast %416 : vector<8x1xf32> to vector<8x8xf32>
    %418 = arith.mulf %413, %417 : vector<8x8xf32>
    %419 = arith.truncf %418 : vector<8x8xf32> to vector<8x8xbf16>
    %cst_119 = arith.constant dense<0.000000e+00> : vector<8x8xf32>
    %420 = tpu.matmul %419, %405, %cst_119 {dimension_numbers = #tpu.dot_dimension_numbers<[1], [0], [0], [1], [0, 0, 1, 1], [], []>} : vector<8x8xbf16>, vector<8x8xbf16>, vector<8x8xf32> -> vector<8x8xf32>
    %421 = vector.extract_strided_slice %376 {offsets = [0, 16], sizes = [8, 8], strides = [1, 1]} : vector<8x32xf32> to vector<8x8xf32>
    %422 = arith.truncf %421 : vector<8x8xf32> to vector<8x8xbf16>
    %423 = vector.extract_strided_slice %377 {offsets = [0, 16], sizes = [8, 8], strides = [1, 1]} : vector<8x32xf32> to vector<8x8xf32>
    %424 = arith.truncf %423 : vector<8x8xf32> to vector<8x8xbf16>
    %425 = vector.extract_strided_slice %378 {offsets = [0, 16], sizes = [8, 8], strides = [1, 1]} : vector<8x32xf32> to vector<8x8xf32>
    %426 = arith.truncf %425 : vector<8x8xf32> to vector<8x8xbf16>
    %cst_120 = arith.constant dense<0.000000e+00> : vector<8x8xf32>
    %427 = tpu.matmul %422, %424, %cst_120 {dimension_numbers = #tpu.dot_dimension_numbers<[1], [1], [0], [0], [0, 0, 1, 0], [], []>} : vector<8x8xbf16>, vector<8x8xbf16>, vector<8x8xf32> -> vector<8x8xf32>
    %cst_121 = arith.constant 0.353553385 : f32
    %428 = vector.broadcast %cst_121 : f32 to vector<8x8xf32>
    %429 = arith.mulf %427, %428 : vector<8x8xf32>
    %cst_122 = arith.constant dense<0xFF800000> : vector<8xf32>
    %430 = vector.multi_reduction <maximumf>, %429, %cst_122 [1] : vector<8x8xf32> to vector<8xf32>
    %431 = vector.shape_cast %430 : vector<8xf32> to vector<8x1xf32>
    %432 = vector.broadcast %431 : vector<8x1xf32> to vector<8x8xf32>
    %433 = arith.subf %429, %432 : vector<8x8xf32>
    %434 = math.exp %433 : vector<8x8xf32>
    %cst_123 = arith.constant dense<0.000000e+00> : vector<8xf32>
    %435 = vector.multi_reduction <add>, %434, %cst_123 [1] : vector<8x8xf32> to vector<8xf32>
    %436 = vector.shape_cast %435 : vector<8xf32> to vector<8x1xf32>
    %437 = tpu.reciprocal %436 {approx = true} : vector<8x1xf32> -> vector<8x1xf32>
    %438 = vector.broadcast %437 : vector<8x1xf32> to vector<8x8xf32>
    %439 = arith.mulf %434, %438 : vector<8x8xf32>
    %440 = arith.truncf %439 : vector<8x8xf32> to vector<8x8xbf16>
    %cst_124 = arith.constant dense<0.000000e+00> : vector<8x8xf32>
    %441 = tpu.matmul %440, %426, %cst_124 {dimension_numbers = #tpu.dot_dimension_numbers<[1], [0], [0], [1], [0, 0, 1, 1], [], []>} : vector<8x8xbf16>, vector<8x8xbf16>, vector<8x8xf32> -> vector<8x8xf32>
    %442 = vector.extract_strided_slice %376 {offsets = [0, 24], sizes = [8, 8], strides = [1, 1]} : vector<8x32xf32> to vector<8x8xf32>
    %443 = arith.truncf %442 : vector<8x8xf32> to vector<8x8xbf16>
    %444 = vector.extract_strided_slice %377 {offsets = [0, 24], sizes = [8, 8], strides = [1, 1]} : vector<8x32xf32> to vector<8x8xf32>
    %445 = arith.truncf %444 : vector<8x8xf32> to vector<8x8xbf16>
    %446 = vector.extract_strided_slice %378 {offsets = [0, 24], sizes = [8, 8], strides = [1, 1]} : vector<8x32xf32> to vector<8x8xf32>
    %447 = arith.truncf %446 : vector<8x8xf32> to vector<8x8xbf16>
    %cst_125 = arith.constant dense<0.000000e+00> : vector<8x8xf32>
    %448 = tpu.matmul %443, %445, %cst_125 {dimension_numbers = #tpu.dot_dimension_numbers<[1], [1], [0], [0], [0, 0, 1, 0], [], []>} : vector<8x8xbf16>, vector<8x8xbf16>, vector<8x8xf32> -> vector<8x8xf32>
    %cst_126 = arith.constant 0.353553385 : f32
    %449 = vector.broadcast %cst_126 : f32 to vector<8x8xf32>
    %450 = arith.mulf %448, %449 : vector<8x8xf32>
    %cst_127 = arith.constant dense<0xFF800000> : vector<8xf32>
    %451 = vector.multi_reduction <maximumf>, %450, %cst_127 [1] : vector<8x8xf32> to vector<8xf32>
    %452 = vector.shape_cast %451 : vector<8xf32> to vector<8x1xf32>
    %453 = vector.broadcast %452 : vector<8x1xf32> to vector<8x8xf32>
    %454 = arith.subf %450, %453 : vector<8x8xf32>
    %455 = math.exp %454 : vector<8x8xf32>
    %cst_128 = arith.constant dense<0.000000e+00> : vector<8xf32>
    %456 = vector.multi_reduction <add>, %455, %cst_128 [1] : vector<8x8xf32> to vector<8xf32>
    %457 = vector.shape_cast %456 : vector<8xf32> to vector<8x1xf32>
    %458 = tpu.reciprocal %457 {approx = true} : vector<8x1xf32> -> vector<8x1xf32>
    %459 = vector.broadcast %458 : vector<8x1xf32> to vector<8x8xf32>
    %460 = arith.mulf %455, %459 : vector<8x8xf32>
    %461 = arith.truncf %460 : vector<8x8xf32> to vector<8x8xbf16>
    %cst_129 = arith.constant dense<0.000000e+00> : vector<8x8xf32>
    %462 = tpu.matmul %461, %447, %cst_129 {dimension_numbers = #tpu.dot_dimension_numbers<[1], [0], [0], [1], [0, 0, 1, 1], [], []>} : vector<8x8xbf16>, vector<8x8xbf16>, vector<8x8xf32> -> vector<8x8xf32>
    %463 = tpu.concatenate %399, %420, %441, %462 in 1 : vector<8x8xf32>, vector<8x8xf32>, vector<8x8xf32>, vector<8x8xf32> -> vector<8x32xf32>
    %464 = tpu.concatenate %375, %463 in 0 : vector<8x32xf32>, vector<8x32xf32> -> vector<16x32xf32>
    %465 = arith.truncf %464 : vector<16x32xf32> to vector<16x32xbf16>
    %c1_130 = arith.constant 1 : index
    %c0_131 = arith.constant 0 : index
    %c0_132 = arith.constant 0 : index
    %466 = vector.load %arg6[%c1_130, %c0_131, %c0_132] : memref<2x32x32xbf16, #tpu.memory_space<vmem>>, vector<1x32x32xbf16>
    %467 = vector.shape_cast %466 : vector<1x32x32xbf16> to vector<32x32xbf16>
    %cst_133 = arith.constant dense<0.000000e+00> : vector<16x32xf32>
    %468 = tpu.matmul %465, %467, %cst_133 {dimension_numbers = #tpu.dot_dimension_numbers<[1], [0], [0], [1], [0, 0, 1, 1], [], []>} : vector<16x32xbf16>, vector<32x32xbf16>, vector<16x32xf32> -> vector<16x32xf32>
    %469 = vector.broadcast %271 : vector<1x32xf32> to vector<16x32xf32>
    %470 = arith.addf %468, %469 : vector<16x32xf32>
    %471 = arith.addf %268, %470 : vector<16x32xf32>
    %cst_134 = arith.constant dense<0.000000e+00> : vector<16xf32>
    %472 = vector.multi_reduction <add>, %471, %cst_134 [1] : vector<16x32xf32> to vector<16xf32>
    %473 = vector.shape_cast %472 : vector<16xf32> to vector<16x1xf32>
    %cst_135 = arith.constant 3.200000e+01 : f32
    %474 = vector.broadcast %cst_135 : f32 to vector<16x1xf32>
    %475 = arith.divf %473, %474 : vector<16x1xf32>
    %476 = vector.broadcast %475 : vector<16x1xf32> to vector<16x32xf32>
    %477 = arith.subf %471, %476 : vector<16x32xf32>
    %478 = arith.mulf %477, %477 : vector<16x32xf32>
    %cst_136 = arith.constant dense<0.000000e+00> : vector<16xf32>
    %479 = vector.multi_reduction <add>, %478, %cst_136 [1] : vector<16x32xf32> to vector<16xf32>
    %480 = vector.shape_cast %479 : vector<16xf32> to vector<16x1xf32>
    %cst_137 = arith.constant 3.200000e+01 : f32
    %481 = vector.broadcast %cst_137 : f32 to vector<16x1xf32>
    %482 = arith.divf %480, %481 : vector<16x1xf32>
    %483 = vector.broadcast %475 : vector<16x1xf32> to vector<16x32xf32>
    %484 = arith.subf %471, %483 : vector<16x32xf32>
    %cst_138 = arith.constant 9.99999974E-6 : f32
    %485 = vector.broadcast %cst_138 : f32 to vector<16x1xf32>
    %486 = arith.addf %482, %485 : vector<16x1xf32>
    %487 = math.rsqrt %486 : vector<16x1xf32>
    %488 = vector.broadcast %487 : vector<16x1xf32> to vector<16x32xf32>
    %489 = arith.mulf %484, %488 : vector<16x32xf32>
    %490 = vector.broadcast %273 : vector<1x32xf32> to vector<16x32xf32>
    %491 = arith.mulf %489, %490 : vector<16x32xf32>
    %492 = vector.broadcast %274 : vector<1x32xf32> to vector<16x32xf32>
    %493 = arith.addf %491, %492 : vector<16x32xf32>
    %494 = arith.truncf %493 : vector<16x32xf32> to vector<16x32xbf16>
    %c1_139 = arith.constant 1 : index
    %c0_140 = arith.constant 0 : index
    %c0_141 = arith.constant 0 : index
    %495 = vector.load %arg7[%c1_139, %c0_140, %c0_141] : memref<2x32x64xbf16, #tpu.memory_space<vmem>>, vector<1x32x64xbf16>
    %496 = vector.shape_cast %495 : vector<1x32x64xbf16> to vector<32x64xbf16>
    %cst_142 = arith.constant dense<0.000000e+00> : vector<16x64xf32>
    %497 = tpu.matmul %494, %496, %cst_142 {dimension_numbers = #tpu.dot_dimension_numbers<[1], [0], [0], [1], [0, 0, 1, 1], [], []>} : vector<16x32xbf16>, vector<32x64xbf16>, vector<16x64xf32> -> vector<16x64xf32>
    %c1_143 = arith.constant 1 : index
    %c0_144 = arith.constant 0 : index
    %c0_145 = arith.constant 0 : index
    %498 = vector.load %arg8[%c1_143, %c0_144, %c0_145] : memref<2x1x64xf32, #tpu.memory_space<vmem>>, vector<1x1x64xf32>
    %499 = vector.shape_cast %498 : vector<1x1x64xf32> to vector<1x64xf32>
    %500 = vector.broadcast %499 : vector<1x64xf32> to vector<16x64xf32>
    %501 = arith.addf %497, %500 : vector<16x64xf32>
    %cst_146 = arith.constant 0.000000e+00 : f32
    %502 = vector.broadcast %cst_146 : f32 to vector<16x64xf32>
    %503 = arith.maximumf %501, %502 : vector<16x64xf32>
    %504 = arith.truncf %503 : vector<16x64xf32> to vector<16x64xbf16>
    %c1_147 = arith.constant 1 : index
    %c0_148 = arith.constant 0 : index
    %c0_149 = arith.constant 0 : index
    %505 = vector.load %arg9[%c1_147, %c0_148, %c0_149] : memref<2x64x32xbf16, #tpu.memory_space<vmem>>, vector<1x64x32xbf16>
    %506 = vector.shape_cast %505 : vector<1x64x32xbf16> to vector<64x32xbf16>
    %cst_150 = arith.constant dense<0.000000e+00> : vector<16x32xf32>
    %507 = tpu.matmul %504, %506, %cst_150 {dimension_numbers = #tpu.dot_dimension_numbers<[1], [0], [0], [1], [0, 0, 1, 1], [], []>} : vector<16x64xbf16>, vector<64x32xbf16>, vector<16x32xf32> -> vector<16x32xf32>
    %508 = vector.broadcast %272 : vector<1x32xf32> to vector<16x32xf32>
    %509 = arith.addf %507, %508 : vector<16x32xf32>
    %510 = arith.addf %493, %509 : vector<16x32xf32>
    %cst_151 = arith.constant dense<0.000000e+00> : vector<16xf32>
    %511 = vector.multi_reduction <add>, %510, %cst_151 [1] : vector<16x32xf32> to vector<16xf32>
    %512 = vector.shape_cast %511 : vector<16xf32> to vector<16x1xf32>
    %cst_152 = arith.constant 3.200000e+01 : f32
    %513 = vector.broadcast %cst_152 : f32 to vector<16x1xf32>
    %514 = arith.divf %512, %513 : vector<16x1xf32>
    %515 = vector.broadcast %514 : vector<16x1xf32> to vector<16x32xf32>
    %516 = arith.subf %510, %515 : vector<16x32xf32>
    %517 = arith.mulf %516, %516 : vector<16x32xf32>
    %cst_153 = arith.constant dense<0.000000e+00> : vector<16xf32>
    %518 = vector.multi_reduction <add>, %517, %cst_153 [1] : vector<16x32xf32> to vector<16xf32>
    %519 = vector.shape_cast %518 : vector<16xf32> to vector<16x1xf32>
    %cst_154 = arith.constant 3.200000e+01 : f32
    %520 = vector.broadcast %cst_154 : f32 to vector<16x1xf32>
    %521 = arith.divf %519, %520 : vector<16x1xf32>
    %522 = vector.broadcast %514 : vector<16x1xf32> to vector<16x32xf32>
    %523 = arith.subf %510, %522 : vector<16x32xf32>
    %cst_155 = arith.constant 9.99999974E-6 : f32
    %524 = vector.broadcast %cst_155 : f32 to vector<16x1xf32>
    %525 = arith.addf %521, %524 : vector<16x1xf32>
    %526 = math.rsqrt %525 : vector<16x1xf32>
    %527 = vector.broadcast %526 : vector<16x1xf32> to vector<16x32xf32>
    %528 = arith.mulf %523, %527 : vector<16x32xf32>
    %529 = vector.broadcast %275 : vector<1x32xf32> to vector<16x32xf32>
    %530 = arith.mulf %528, %529 : vector<16x32xf32>
    %531 = vector.broadcast %276 : vector<1x32xf32> to vector<16x32xf32>
    %532 = arith.addf %530, %531 : vector<16x32xf32>
    %533 = vector.extract_strided_slice %532 {offsets = [7, 0], sizes = [1, 32], strides = [1, 1]} : vector<16x32xf32> to vector<1x32xf32>
    %534 = vector.extract_strided_slice %532 {offsets = [15, 0], sizes = [1, 32], strides = [1, 1]} : vector<16x32xf32> to vector<1x32xf32>
    %535 = tpu.concatenate %533, %534 in 0 : vector<1x32xf32>, vector<1x32xf32> -> vector<2x32xf32>
    %536 = arith.truncf %535 : vector<2x32xf32> to vector<2x32xbf16>
    %c0_156 = arith.constant 0 : index
    %c0_157 = arith.constant 0 : index
    %537 = vector.load %arg11[%c0_156, %c0_157] : memref<32x128xbf16, #tpu.memory_space<vmem>>, vector<32x128xbf16>
    %cst_158 = arith.constant dense<0.000000e+00> : vector<2x128xf32>
    %538 = tpu.matmul %536, %537, %cst_158 {dimension_numbers = #tpu.dot_dimension_numbers<[1], [0], [0], [1], [0, 0, 1, 1], [], []>} : vector<2x32xbf16>, vector<32x128xbf16>, vector<2x128xf32> -> vector<2x128xf32>
    %c0_159 = arith.constant 0 : index
    %c0_160 = arith.constant 0 : index
    %539 = vector.load %arg12[%c0_159, %c0_160] : memref<1x128xf32, #tpu.memory_space<vmem>>, vector<1x128xf32>
    %540 = vector.broadcast %539 : vector<1x128xf32> to vector<2x128xf32>
    %541 = arith.addf %538, %540 : vector<2x128xf32>
    %c0_161 = arith.constant 0 : index
    %c0_162 = arith.constant 0 : index
    %542 = vector.load %arg13[%c0_161, %c0_162] : memref<2x128xf32, #tpu.memory_space<vmem>>, vector<2x128xf32>
    tpu.vector_store %arg13[%c0_161, %c0_162], %541 {strides = array<i32>} : memref<2x128xf32, #tpu.memory_space<vmem>>, vector<2x128xf32>,
    return
  }
  func.func @transform_0(%arg0: i32) -> (i32, i32) {
    %c0_i32 = arith.constant 0 : i32
    %c0_i32_0 = arith.constant 0 : i32
    %c0_i32_1 = arith.constant 0 : i32
    return %c0_i32, %c0_i32_0 : i32, i32
  }
  func.func @transform_1(%arg0: i32) -> (i32, i32) {
    %c0_i32 = arith.constant 0 : i32
    %c0_i32_0 = arith.constant 0 : i32
    %c0_i32_1 = arith.constant 0 : i32
    return %c0_i32, %c0_i32_0 : i32, i32
  }
  func.func @transform_2(%arg0: i32) -> (i32, i32) {
    %c0_i32 = arith.constant 0 : i32
    %c0_i32_0 = arith.constant 0 : i32
    %c0_i32_1 = arith.constant 0 : i32
    return %c0_i32, %c0_i32_0 : i32, i32
  }
  func.func @transform_3(%arg0: i32) -> (i32, i32, i32) {
    %c0_i32 = arith.constant 0 : i32
    %c0_i32_0 = arith.constant 0 : i32
    %c0_i32_1 = arith.constant 0 : i32
    %c0_i32_2 = arith.constant 0 : i32
    return %c0_i32, %c0_i32_0, %c0_i32_1 : i32, i32, i32
  }
  func.func @transform_4(%arg0: i32) -> (i32, i32, i32) {
    %c0_i32 = arith.constant 0 : i32
    %c0_i32_0 = arith.constant 0 : i32
    %c0_i32_1 = arith.constant 0 : i32
    %c0_i32_2 = arith.constant 0 : i32
    return %c0_i32, %c0_i32_0, %c0_i32_1 : i32, i32, i32
  }
  func.func @transform_5(%arg0: i32) -> (i32, i32, i32) {
    %c0_i32 = arith.constant 0 : i32
    %c0_i32_0 = arith.constant 0 : i32
    %c0_i32_1 = arith.constant 0 : i32
    %c0_i32_2 = arith.constant 0 : i32
    return %c0_i32, %c0_i32_0, %c0_i32_1 : i32, i32, i32
  }
  func.func @transform_6(%arg0: i32) -> (i32, i32, i32) {
    %c0_i32 = arith.constant 0 : i32
    %c0_i32_0 = arith.constant 0 : i32
    %c0_i32_1 = arith.constant 0 : i32
    %c0_i32_2 = arith.constant 0 : i32
    return %c0_i32, %c0_i32_0, %c0_i32_1 : i32, i32, i32
  }
  func.func @transform_7(%arg0: i32) -> (i32, i32, i32) {
    %c0_i32 = arith.constant 0 : i32
    %c0_i32_0 = arith.constant 0 : i32
    %c0_i32_1 = arith.constant 0 : i32
    %c0_i32_2 = arith.constant 0 : i32
    return %c0_i32, %c0_i32_0, %c0_i32_1 : i32, i32, i32
  }
  func.func @transform_8(%arg0: i32) -> (i32, i32, i32) {
    %c0_i32 = arith.constant 0 : i32
    %c0_i32_0 = arith.constant 0 : i32
    %c0_i32_1 = arith.constant 0 : i32
    %c0_i32_2 = arith.constant 0 : i32
    return %c0_i32, %c0_i32_0, %c0_i32_1 : i32, i32, i32
  }
  func.func @transform_9(%arg0: i32) -> (i32, i32, i32) {
    %c0_i32 = arith.constant 0 : i32
    %c0_i32_0 = arith.constant 0 : i32
    %c0_i32_1 = arith.constant 0 : i32
    %c0_i32_2 = arith.constant 0 : i32
    return %c0_i32, %c0_i32_0, %c0_i32_1 : i32, i32, i32
  }
  func.func @transform_10(%arg0: i32) -> (i32, i32) {
    %c0_i32 = arith.constant 0 : i32
    %c0_i32_0 = arith.constant 0 : i32
    %c0_i32_1 = arith.constant 0 : i32
    return %c0_i32, %c0_i32_0 : i32, i32
  }
  func.func @transform_11(%arg0: i32) -> (i32, i32) {
    %c0_i32 = arith.constant 0 : i32
    %c0_i32_0 = arith.constant 0 : i32
    %c0_i32_1 = arith.constant 0 : i32
    return %c0_i32, %c0_i32_0 : i32, i32
  }
  func.func @transform_12(%arg0: i32) -> (i32, i32) {
    %c0_i32 = arith.constant 0 : i32
    %c0_i32_0 = arith.constant 0 : i32
    %c0_i32_1 = arith.constant 0 : i32
    return %c0_i32, %c0_i32_0 : i32, i32
  }
}

</mosaic_0001>

<bundles_post_ra>
// kernel: classifier_forward.1
= control target key start
LH: loop header
LB: loop body
LE: loop exit
PB: predicated region body
PF: predicated region fallthrough
CT: control target
= control target key end

     0   :  { %v3418_v1 = vmov 0.0   ;;  %vm3419_vm0 = vmmov 0   ;;  %vm60_vm1 = vcmask 130048   ;;  %s4134_s0 = inlined_call_operand.vmem [shape: bf16[16,16], index: 0, kind: input, shape index: {}]   ;;  %s4135_s1 = inlined_call_operand.vmem [shape: bf16[16,32], index: 1, kind: input, shape index: {}]   ;;  %s4136_s2 = inlined_call_operand.vmem [shape: f32[16,32], index: 2, kind: input, shape index: {}]   ;;  %s4137_s3 = inlined_call_operand.vmem [shape: bf16[2,32,96], index: 3, kind: input, shape index: {}]   ;;  %s4138_s4 = inlined_call_operand.vmem [shape: f32[2,1,96], index: 4, kind: input, shape index: {}]   ;;  %s4139_s5 = inlined_call_operand.vmem [shape: bf16[2,32,32], index: 5, kind: input, shape index: {}]   ;;  %s4140_s6 = inlined_call_operand.vmem [shape: bf16[2,32,64], index: 6, kind: input, shape index: {}]   ;;  %s4141_s7 = inlined_call_operand.vmem [shape: f32[2,1,64], index: 7, kind: input, shape index: {}]   ;;  %s4142_s8 = inlined_call_operand.vmem [shape: bf16[2,64,32], index: 8, kind: input, shape index: {}]   ;;  %s4143_s9 = inlined_call_operand.vmem [shape: f32[2,6,32], index: 9, kind: input, shape index: {}]   ;;  %s4144_s10 = inlined_call_operand.vmem [shape: bf16[32,128], index: 10, kind: input, shape index: {}]   ;;  %s4145_s11 = inlined_call_operand.vmem [shape: f32[1,128], index: 11, kind: input, shape index: {}]   ;;  %s4146_s12 = inlined_call_operand.hbm [shape: f32[2,128], index: 12, kind: output, shape index: {}]  }
   0x1   :  { %v3290_v0 = vld [vmem:[%s4135_s1] sm:$0xff]   ;;  %2965 = vmatprep.subr.bf16.mxu0 %v3418_v1  ;;  %2971 = vmatprep.subr.bf16.mxu1 %v3418_v1 }
   0x2   :  { %v3291_v2 = vld [vmem:[%s4134_s0] sm:$0xff]   ;;  %2966 = vmatpush3.bf16.msra.mxu0 %v3290_v0  ;;  %2967 = vmatprep.mubr.msk.bf16.mxu0 %vm3419_vm0, %v3418_v1 }
   0x3   :  { %2975 = vmatprep.mubr.msk.bf16.mxu1 %vm3419_vm0, %v3418_v1  ;;  %2979 = vmatprep.subr.bf16.mxu0 %v3418_v1 }
   0x5   :  { %2968 = vmatmul.mubr.msk.bf16.vlgmr.msra.gmra.mrb[0].mxu0 %vm60_vm1, %v3291_v2 }
   0x6   :  { %2981 = vmatprep.mubr.msk.bf16.mxu0 %vm3419_vm0, %v3418_v1 }
   0x7   :  { %17 = vsyncpa [#allocation3], 0  ;;  %v3292_v3 = vld [vmem:[%s4137_s3] sm:$0xff]   ;;  %v3293_v4 = vld [vmem:[%s4137_s3 + $0x8] sm:$0xff]   ;;  %vm130_vm2 = vcmask 261120   ;;  %s3421_s15 = smov 96  }
   0x8   :  { %2972 = vmatpush3.bf16.msra.mxu1 %v3292_v3  ;;  %v47_v5 = vld [vmem:[%s4136_s2] sm:$0xff]  ;;  %v48_v7 = vld [vmem:[%s4136_s2 + $0x8] sm:$0xff]  ;;  %s3420_s2 = smov 120   ;;  %s3422_s16 = smov 80   ;;  %vm179_vm3 = vcmask 64512   ;;  %vm244_vm4 = vcmask 1043456  }
   0x9   :  { %2973 = vmatprep.subr.bf16.mxu1 %v3418_v1  ;;  %v2777_v14 = vld [vmem:[%s4138_s4] ss:$0 sm:$0xff]  ;;  %s3423_s17 = smov 88   ;;  %s3424_s18 = smov 72   ;;  %vm635_vm5 = vcmask 195584   ;;  %vm1309_vm6 = vcmask 523264  }
   0xa   :  { %s3425_s19 = smov 112   ;;  %s3426_s20 = smov 104   ;;  %vm2690_vm7 = vcmask 1040384  }
   0xb   :  { %s3427_s21 = smov 56   ;;  %s3428_s22 = smov 64  }
   0xc   :  { %2974 = vmatpush3.bf16.msra.mxu1 %v3293_v4  ;;  %s3429_s23 = smov 48   ;;  %s3430_s24 = smov 40  }
   0xd   :  { %2985 = vmatprep.subr.bf16.mxu1 %v3418_v1  ;;  %s3431_s25 = smov 8   ;;  %s3432_s28 = smov 16  }
   0xe   :  { %s4147_s29 = smov 24  }
  0xd8   :  { %v98_v6 = vpop.f32.mrb[0].mxu0 }
  0xd9   :  { %v2969_v8 = vpop.f32.mrb[1].mxu0  ;;  %v3530_v10 = vadd.f32 %v98_v6, %v47_v5 }
  0xda   :  { %v101_v9 = vpop.f32.mrb[2].mxu0 }
  0xdb   :  { %v3532_v11 = vadd.f32 %v101_v9, %v48_v7  ;;  %v2970_v12 = vpop.f32.mrb[3].mxu0 }
  0xdd   :  { %v106_v13 = vpack.c.bf16 %v3532_v11, %v3530_v10 }
  0xdf   :  { %2976 = vmatmul.mubr.msk.bf16.vlgmr.msra.gmra.mrb[0].mxu1 %vm130_vm2, %v106_v13 }
  0xe0   :  { %2987 = vmatprep.mubr.msk.bf16.mxu1 %vm3419_vm0, %v3418_v1 }
 0x1b2   :  { %v168_v15 = vpop.f32.mrb[0].mxu1 }
 0x1b3   :  { %v169_v16 = vadd.f32 %v2777_v14, %v168_v15  ;;  %v2977_v17 = vpop.f32.mrb[1].mxu1 }
 0x1b4   :  { %v171_v18 = vpop.f32.mrb[2].mxu1 }
 0x1b5   :  { %v3542_v19 = vpack.c.bf16 %v169_v16, %v169_v16  ;;  %v2978_v20 = vpop.f32.mrb[3].mxu1  ;;  %v172_v21 = vadd.f32 %v2777_v14, %v171_v18 }
 0x1b7   :  { %288 = vrot.lane.b32.xlu1 %v3542_v19, %s3420_s2  ;;  %177 = vrot.lane.b32.xlu0 %v3542_v19, %s3421_s15  ;;  %v3556_v22 = vpack.c.bf16 %v172_v21, %v172_v21 }
 0x1bb   :  { %401 = vrot.lane.b32.xlu1 %v3542_v19, %s3422_s16  ;;  %290 = vrot.lane.b32.xlu0 %v3542_v19, %s3423_s17 }
 0x1bf   :  { %512 = vrot.lane.b32.xlu1 %v3542_v19, %s3424_s18  ;;  %399 = vrot.lane.b32.xlu0 %v3542_v19, %s3425_s19 }
 0x1c3   :  { %510 = vrot.lane.b32.xlu0 %v3542_v19, %s3426_s20  ;;  %639 = vrot.lane.b32.xlu1 %v3556_v22, %s3421_s15 }
 0x1c7   :  { %750 = vrot.lane.b32.xlu0 %v3556_v22, %s3423_s17  ;;  %748 = vrot.lane.b32.xlu1 %v3556_v22, %s3420_s2 }
 0x1cb   :  { %861 = vrot.lane.b32.xlu0 %v3556_v22, %s3422_s16  ;;  %859 = vrot.lane.b32.xlu1 %v3556_v22, %s3425_s19 }
 0x1cf   :  { %972 = vrot.lane.b32.xlu0 %v3556_v22, %s3424_s18  ;;  %970 = vrot.lane.b32.xlu1 %v3556_v22, %s3426_s20 }
 0x229   :  { %v178_v23 = vpop.permute.xlu0 %177  ;;  %v289_v26 = vpop.permute.xlu1 %288 }
 0x22a   :  { %v184_v24 = vsel %vm179_vm3, %v178_v23, 0 }
 0x22b   :  { %2980 = vmatpush3.bf16.xpose.msra.mxu0 %v184_v24 }
 0x22c   :  { %2991 = vmatprep.subr.bf16.mxu0 %v3418_v1 }
 0x22d   :  { %v291_v25 = vpop.permute.xlu0 %290  ;;  %v402_v28 = vpop.permute.xlu1 %401 }
 0x22e   :  { %v296_v27 = vsel %vm179_vm3, %v291_v25, 0  ;;  %v407_v29 = vsel %vm179_vm3, %v402_v28, 0 }
 0x231   :  { %v513_v30 = vpop.permute.xlu1 %512  ;;  %v400_v31 = vpop.permute.xlu0 %399 }
 0x232   :  { %2982 = vmatmul.mubr.msk.bf16.vlgmr.msra.gmra.mrb[4].mxu0 %vm179_vm3, %v3542_v19  ;;  %v518_v32 = vsel %vm179_vm3, %v513_v30, 0 }
 0x233   :  { %2992 = vmatpush3.bf16.xpose.msra.mxu0 %v296_v27  ;;  %2993 = vmatprep.mubr.msk.bf16.mxu0 %vm3419_vm0, %v3418_v1 }
 0x234   :  { %3003 = vmatprep.subr.bf16.mxu0 %v3418_v1 }
 0x235   :  { %v640_v33 = vpop.permute.xlu1 %639  ;;  %v511_v34 = vpop.permute.xlu0 %510 }
 0x236   :  { %v645_v35 = vsel %vm179_vm3, %v640_v33, 0 }
 0x239   :  { %v751_v36 = vpop.permute.xlu0 %750  ;;  %v749_v39 = vpop.permute.xlu1 %748 }
 0x23a   :  { %2994 = vmatmul.mubr.msk.bf16.vlgmr.msra.gmra.mrb[8].mxu0 %vm179_vm3, %v289_v26  ;;  %v756_v37 = vsel %vm179_vm3, %v751_v36, 0 }
 0x23b   :  { %3004 = vmatpush3.bf16.xpose.msra.mxu0 %v407_v29  ;;  %3005 = vmatprep.mubr.msk.bf16.mxu0 %vm3419_vm0, %v3418_v1 }
 0x23c   :  { %3015 = vmatprep.subr.bf16.mxu0 %v3418_v1 }
 0x23d   :  { %v862_v38 = vpop.permute.xlu0 %861  ;;  %v860_v42 = vpop.permute.xlu1 %859 }
 0x23e   :  { %v867_v40 = vsel %vm179_vm3, %v862_v38, 0 }
 0x241   :  { %v973_v41 = vpop.permute.xlu0 %972  ;;  %v971_v44 = vpop.permute.xlu1 %970 }
 0x242   :  { %3006 = vmatmul.mubr.msk.bf16.vlgmr.msra.gmra.mrb[12].mxu0 %vm179_vm3, %v400_v31  ;;  %v978_v43 = vsel %vm179_vm3, %v973_v41, 0 }
 0x243   :  { %3016 = vmatpush3.bf16.xpose.msra.mxu0 %v518_v32  ;;  %3017 = vmatprep.mubr.msk.bf16.mxu0 %vm3419_vm0, %v3418_v1 }
 0x244   :  { %3027 = vmatprep.subr.bf16.mxu0 %v3418_v1 }
 0x24a   :  { %3018 = vmatmul.mubr.msk.bf16.vlgmr.msra.gmra.mrb[16].mxu0 %vm179_vm3, %v511_v34 }
 0x24b   :  { %3028 = vmatpush3.bf16.xpose.msra.mxu0 %v645_v35  ;;  %3029 = vmatprep.mubr.msk.bf16.mxu0 %vm3419_vm0, %v3418_v1 }
 0x24c   :  { %3039 = vmatprep.subr.bf16.mxu0 %v3418_v1 }
 0x252   :  { %3030 = vmatmul.mubr.msk.bf16.vlgmr.msra.gmra.mrb[20].mxu0 %vm179_vm3, %v3556_v22 }
 0x253   :  { %3040 = vmatpush3.bf16.xpose.msra.mxu0 %v756_v37  ;;  %3041 = vmatprep.mubr.msk.bf16.mxu0 %vm3419_vm0, %v3418_v1 }
 0x254   :  { %3051 = vmatprep.subr.bf16.mxu0 %v3418_v1 }
 0x25a   :  { %3042 = vmatmul.mubr.msk.bf16.vlgmr.msra.gmra.mrb[24].mxu0 %vm179_vm3, %v749_v39 }
 0x25b   :  { %3052 = vmatpush3.bf16.xpose.msra.mxu0 %v867_v40  ;;  %3053 = vmatprep.mubr.msk.bf16.mxu0 %vm3419_vm0, %v3418_v1 }
 0x25c   :  { %3063 = vmatprep.subr.bf16.mxu0 %v3418_v1 }
 0x262   :  { %3054 = vmatmul.mubr.msk.bf16.vlgmr.msra.gmra.mrb[28].mxu0 %vm179_vm3, %v860_v42 }
 0x263   :  { %3064 = vmatpush3.bf16.xpose.msra.mxu0 %v978_v43  ;;  %3065 = vmatprep.mubr.msk.bf16.mxu0 %vm3419_vm0, %v3418_v1 }
 0x264   :  { %3075 = vmatprep.subr.bf16.mxu0 %v3418_v1 }
 0x26a   :  { %3066 = vmatmul.mubr.msk.bf16.vlgmr.msra.gmra.mrb[32].mxu0 %vm179_vm3, %v971_v44 }
 0x26b   :  { %3079 = vmatprep.mubr.msk.bf16.mxu0 %vm3419_vm0, %v3418_v1 }
 0x305   :  { %v220_v45 = vpop.f32.mrb[4].mxu0 }
 0x306   :  { %v226_v46 = vmul.f32 0.35355338, %v220_v45  ;;  %v2983_v47 = vpop.f32.mrb[5].mxu0 }
 0x307   :  { %v223_v48 = vpop.f32.mrb[6].mxu0 }
 0x308   :  { %v2984_v49 = vpop.f32.mrb[7].mxu0  ;;  %v227_v50 = vsel %vm179_vm3, %v226_v46, -inf }
 0x309   :  { %228 = vmax.xlane.f32.xlu0 %v227_v50 }
 0x30d   :  { %v332_v51 = vpop.f32.mrb[8].mxu0 }
 0x30e   :  { %v338_v52 = vmul.f32 0.35355338, %v332_v51  ;;  %v2995_v53 = vpop.f32.mrb[9].mxu0 }
 0x30f   :  { %v335_v54 = vpop.f32.mrb[10].mxu0 }
 0x310   :  { %v2996_v55 = vpop.f32.mrb[11].mxu0  ;;  %v339_v56 = vsel %vm179_vm3, %v338_v52, -inf }
 0x311   :  { %340 = vmax.xlane.f32.xlu1 %v339_v56 }
 0x315   :  { %v443_v57 = vpop.f32.mrb[12].mxu0 }
 0x316   :  { %v449_v58 = vmul.f32 0.35355338, %v443_v57  ;;  %v3007_v59 = vpop.f32.mrb[13].mxu0 }
 0x317   :  { %v446_v60 = vpop.f32.mrb[14].mxu0 }
 0x318   :  { %v3008_v61 = vpop.f32.mrb[15].mxu0  ;;  %v450_v62 = vsel %vm179_vm3, %v449_v58, -inf }
 0x319   :  { %451 = vmax.xlane.f32.xlu0 %v450_v62 }
 0x31d   :  { %v554_v63 = vpop.f32.mrb[16].mxu0 }
 0x31e   :  { %v3619_v0 = vmul.f32 0.35355338, %v554_v63  ;;  %v3019_v2 = vpop.f32.mrb[17].mxu0 }
 0x31f   :  { %v557_v3 = vpop.f32.mrb[18].mxu0 }
 0x320   :  { %v3020_v4 = vpop.f32.mrb[19].mxu0  ;;  %v561_v5 = vsel %vm179_vm3, %v3619_v0, -inf }
 0x321   :  { %562 = vmax.xlane.f32.xlu0 %v561_v5 }
 0x325   :  { %v681_v6 = vpop.f32.mrb[20].mxu0 }
 0x326   :  { %v3623_v7 = vmul.f32 0.35355338, %v681_v6  ;;  %v3031_v8 = vpop.f32.mrb[21].mxu0 }
 0x327   :  { %v684_v9 = vpop.f32.mrb[22].mxu0 }
 0x328   :  { %v3032_v12 = vpop.f32.mrb[23].mxu0  ;;  %v688_v13 = vsel %vm179_vm3, %v3623_v7, -inf }
 0x329   :  { %689 = vmax.xlane.f32.xlu1 %v688_v13 }
 0x32d   :  { %v792_v14 = vpop.f32.mrb[24].mxu0 }
 0x32e   :  { %v3627_v15 = vmul.f32 0.35355338, %v792_v14  ;;  %v3043_v16 = vpop.f32.mrb[25].mxu0 }
 0x32f   :  { %v795_v17 = vpop.f32.mrb[26].mxu0 }
 0x330   :  { %v3044_v18 = vpop.f32.mrb[27].mxu0  ;;  %v799_v20 = vsel %vm179_vm3, %v3627_v15, -inf }
 0x331   :  { %800 = vmax.xlane.f32.xlu0 %v799_v20 }
 0x335   :  { %v903_v21 = vpop.f32.mrb[28].mxu0 }
 0x336   :  { %v909_v23 = vmul.f32 0.35355338, %v903_v21  ;;  %v3055_v24 = vpop.f32.mrb[29].mxu0 }
 0x337   :  { %v906_v25 = vpop.f32.mrb[30].mxu0 }
 0x338   :  { %v3056_v26 = vpop.f32.mrb[31].mxu0  ;;  %v910_v27 = vsel %vm179_vm3, %v909_v23, -inf }
 0x339   :  { %911 = vmax.xlane.f32.xlu1 %v910_v27 }
 0x33d   :  { %v1014_v28 = vpop.f32.mrb[32].mxu0 }
 0x33e   :  { %v3067_v29 = vpop.f32.mrb[33].mxu0  ;;  %v3636_v32 = vmul.f32 0.35355338, %v1014_v28 }
 0x33f   :  { %v1017_v30 = vpop.f32.mrb[34].mxu0 }
 0x340   :  { %v3068_v31 = vpop.f32.mrb[35].mxu0  ;;  %v1021_v33 = vsel %vm179_vm3, %v3636_v32, -inf }
 0x347   :  { %351 = vrot.lane.b32.xlu0 %v3542_v19, %s3427_s21 }
 0x34a   :  { %239 = vrot.lane.b32.xlu1 %v3542_v19, %s3428_s22 }
 0x366   :  { %1022 = vmax.xlane.f32.xlu0 %v1021_v33 }
 0x396   :  { %v229_v34 = vpop.xlane.xlu0 %228 }
 0x397   :  { %v230_v35 = vsub.f32 %v226_v46, %v229_v34 }
 0x399   :  { %v231_v36 = vmul.f32 1.442695, %v230_v35 }
 0x39b   :  { %3314 = vpow2.f32 %v231_v36 }
 0x39e   :  { %v341_v37 = vpop.xlane.xlu1 %340 }
 0x39f   :  { %v342_v38 = vsub.f32 %v338_v52, %v341_v37 }
 0x3a1   :  { %v343_v39 = vmul.f32 1.442695, %v342_v38 }
 0x3a3   :  { %3316 = vpow2.f32 %v343_v39 }
 0x3a5   :  { %v3640_v40 = vpop.eup %3314 }
 0x3a6   :  { %v452_v41 = vpop.xlane.xlu0 %451  ;;  %v233_v42 = vsel %vm179_vm3, %v3640_v40, 0.0 }
 0x3a7   :  { %v453_v43 = vsub.f32 %v449_v58, %v452_v41  ;;  %234 = vadd.xlane.f32.xlu1 %v233_v42 }
 0x3a9   :  { %v454_v44 = vmul.f32 1.442695, %v453_v43 }
 0x3ab   :  { %3318 = vpow2.f32 %v454_v44 }
 0x3ad   :  { %v3644_v45 = vpop.eup %3316 }
 0x3ae   :  { %v345_v46 = vsel %vm179_vm3, %v3644_v45, 0.0  ;;  %v563_v52 = vpop.xlane.xlu0 %562 }
 0x3af   :  { %346 = vadd.xlane.f32.xlu0 %v345_v46  ;;  %v564_v54 = vsub.f32 %v3619_v0, %v563_v52 }
 0x3b1   :  { %v565_v55 = vmul.f32 1.442695, %v564_v54 }
 0x3b3   :  { %3320 = vpow2.f32 %v565_v55 }
 0x3b5   :  { %v3648_v47 = vpop.eup %3318 }
 0x3b6   :  { %v456_v48 = vsel %vm179_vm3, %v3648_v47, 0.0  ;;  %v690_v49 = vpop.xlane.xlu1 %689 }
 0x3b7   :  { %457 = vadd.xlane.f32.xlu1 %v456_v48  ;;  %v691_v56 = vsub.f32 %v3623_v7, %v690_v49 }
 0x3b9   :  { %v692_v59 = vmul.f32 1.442695, %v691_v56 }
 0x3bb   :  { %3322 = vpow2.f32 %v692_v59 }
 0x3bd   :  { %v3321_v62 = vpop.eup %3320 }
 0x3be   :  { %v801_v57 = vpop.xlane.xlu0 %800  ;;  %v567_v63 = vsel %vm179_vm3, %v3321_v62, 0.0 }
 0x3bf   :  { %v802_v58 = vsub.f32 %v3627_v15, %v801_v57 }
 0x3c2   :  { %v352_v7 = vpop.permute.xlu0 %351 }
 0x3c3   :  { %v357_v21 = vsel %vm244_vm4, %v352_v7, 0 }
 0x3c5   :  { %462 = vrot.lane.b32.xlu0 %v3542_v19, %s3429_s23  ;;  %v3662_v2 = vpop.eup %3322 }
 0x3c6   :  { %v912_v50 = vpop.xlane.xlu1 %911  ;;  %v694_v3 = vsel %vm179_vm3, %v3662_v2, 0.0 }
 0x3c7   :  { %v913_v60 = vsub.f32 %v909_v23, %v912_v50 }
 0x3c8   :  { %573 = vrot.lane.b32.xlu1 %v3542_v19, %s3430_s24  ;;  %v803_v19 = vmul.f32 1.442695, %v802_v58 }
 0x3c9   :  { %v914_v61 = vmul.f32 1.442695, %v913_v60 }
 0x3ca   :  { %v240_v51 = vpop.permute.xlu1 %239  ;;  %3324 = vpow2.f32 %v803_v19 }
 0x3cb   :  { %v246_v53 = vsel %vm244_vm4, %v240_v51, 0  ;;  %3326 = vpow2.f32 %v914_v61 }
 0x3cc   :  { %2986 = vmatpush3.bf16.msra.mxu1 %v246_v53 }
 0x3cd   :  { %2997 = vmatprep.subr.bf16.mxu1 %v3418_v1 }
 0x3d4   :  { %v3664_v0 = vpop.eup %3324 }
 0x3d5   :  { %v3668_v4 = vpop.eup %3326  ;;  %v805_v5 = vsel %vm179_vm3, %v3664_v0, 0.0 }
 0x3d6   :  { %v916_v6 = vsel %vm179_vm3, %v3668_v4, 0.0 }
 0x3e4   :  { %568 = vadd.xlane.f32.xlu0 %v567_v63 }
 0x3e8   :  { %695 = vadd.xlane.f32.xlu0 %v694_v3 }
 0x3ec   :  { %806 = vadd.xlane.f32.xlu1 %v805_v5  ;;  %917 = vadd.xlane.f32.xlu0 %v916_v6 }
 0x3f3   :  { %v1023_v8 = vpop.xlane.xlu0 %1022 }
 0x3f4   :  { %v1024_v9 = vsub.f32 %v3636_v32, %v1023_v8 }
 0x3f6   :  { %v1025_v12 = vmul.f32 1.442695, %v1024_v9 }
 0x3f8   :  { %3328 = vpow2.f32 %v1025_v12 }
 0x3fd   :  { %811 = vrot.lane.b32.xlu1 %v3556_v22, %s3427_s21 }
 0x401   :  { %922 = vrot.lane.b32.xlu1 %v3556_v22, %s3429_s23 }
 0x402   :  { %v3679_v13 = vpop.eup %3328 }
 0x403   :  { %v1027_v14 = vsel %vm179_vm3, %v3679_v13, 0.0 }
 0x404   :  { %1028 = vadd.xlane.f32.xlu0 %v1027_v14 }
 0x405   :  { %1033 = vrot.lane.b32.xlu1 %v3556_v22, %s3430_s24 }
 0x41a   :  { %700 = vrot.lane.b32.xlu0 %v3556_v22, %s3428_s22 }
 0x434   :  { %v235_v15 = vpop.xlane.xlu1 %234 }
 0x435   :  { %3330 = vrcp.f32 %v235_v15 }
 0x43c   :  { %v347_v16 = vpop.xlane.xlu0 %346 }
 0x43d   :  { %3332 = vrcp.f32 %v347_v16 }
 0x43f   :  { %v3331_v17 = vpop.eup %3330 }
 0x440   :  { %v237_v18 = vmul.f32 %v3331_v17, %v3640_v40  ;;  %v463_v25 = vpop.permute.xlu0 %462 }
 0x441   :  { %v468_v27 = vsel %vm244_vm4, %v463_v25, 0 }
 0x442   :  { %v238_v20 = vpack.c.bf16 %v237_v18, %v237_v18 }
 0x444   :  { %2988 = vmatmul.mubr.msk.bf16.vlgmr.msra.gmra.mrb[4].mxu1 %vm179_vm3, %v238_v20  ;;  %v458_v23 = vpop.xlane.xlu1 %457 }
 0x445   :  { %2998 = vmatpush3.bf16.msra.mxu1 %v357_v21  ;;  %3334 = vrcp.f32 %v458_v23  ;;  %2999 = vmatprep.mubr.msk.bf16.mxu1 %vm3419_vm0, %v3418_v1  ;;  %v3294_v21 = vld [vmem:[%s4139_s5] sm:$0xff]  }
 0x446   :  { %3009 = vmatprep.subr.bf16.mxu1 %v3418_v1  ;;  %3076 = vmatpush3.bf16.msra.mxu0 %v3294_v21 }
 0x447   :  { %v3333_v22 = vpop.eup %3332  ;;  %3077 = vmatprep.subr.bf16.mxu0 %v3418_v1 }
 0x448   :  { %v349_v24 = vmul.f32 %v3333_v22, %v3644_v45  ;;  %v574_v30 = vpop.permute.xlu1 %573 }
 0x449   :  { %v579_v32 = vsel %vm244_vm4, %v574_v30, 0 }
 0x44a   :  { %v350_v26 = vpack.c.bf16 %v349_v24, %v349_v24 }
 0x44c   :  { %3000 = vmatmul.mubr.msk.bf16.vlgmr.msra.gmra.mrb[8].mxu1 %vm179_vm3, %v350_v26  ;;  %v3295_v26 = vld [vmem:[%s4139_s5 + $0x8] sm:$0xff]  }
 0x44d   :  { %3010 = vmatpush3.bf16.msra.mxu1 %v468_v27  ;;  %3011 = vmatprep.mubr.msk.bf16.mxu1 %vm3419_vm0, %v3418_v1 }
 0x44e   :  { %3021 = vmatprep.subr.bf16.mxu1 %v3418_v1  ;;  %3078 = vmatpush3.bf16.msra.mxu0 %v3295_v26 }
 0x44f   :  { %v3335_v28 = vpop.eup %3334  ;;  %3091 = vmatprep.subr.bf16.mxu0 %v3418_v1 }
 0x450   :  { %v460_v29 = vmul.f32 %v3335_v28, %v3648_v47 }
 0x452   :  { %v461_v31 = vpack.c.bf16 %v460_v29, %v460_v29 }
 0x454   :  { %3012 = vmatmul.mubr.msk.bf16.vlgmr.msra.gmra.mrb[12].mxu1 %vm179_vm3, %v461_v31 }
 0x455   :  { %3022 = vmatpush3.bf16.msra.mxu1 %v579_v32  ;;  %3023 = vmatprep.mubr.msk.bf16.mxu1 %vm3419_vm0, %v3418_v1 }
 0x456   :  { %3033 = vmatprep.subr.bf16.mxu1 %v3418_v1 }
 0x471   :  { %v569_v33 = vpop.xlane.xlu0 %568 }
 0x472   :  { %3336 = vrcp.f32 %v569_v33 }
 0x475   :  { %v696_v37 = vpop.xlane.xlu0 %695 }
 0x476   :  { %3338 = vrcp.f32 %v696_v37 }
 0x479   :  { %v807_v38 = vpop.xlane.xlu1 %806  ;;  %v918_v39 = vpop.xlane.xlu0 %917 }
 0x47a   :  { %3340 = vrcp.f32 %v807_v38 }
 0x47b   :  { %3342 = vrcp.f32 %v918_v39 }
 0x47c   :  { %v3337_v34 = vpop.eup %3336 }
 0x47d   :  { %v571_v35 = vmul.f32 %v3337_v34, %v3321_v62  ;;  %v812_v45 = vpop.permute.xlu1 %811 }
 0x47e   :  { %v817_v48 = vsel %vm244_vm4, %v812_v45, 0 }
 0x47f   :  { %v572_v36 = vpack.c.bf16 %v571_v35, %v571_v35 }
 0x480   :  { %v3339_v40 = vpop.eup %3338 }
 0x481   :  { %3024 = vmatmul.mubr.msk.bf16.vlgmr.msra.gmra.mrb[16].mxu1 %vm179_vm3, %v572_v36  ;;  %v698_v42 = vmul.f32 %v3339_v40, %v3662_v2  ;;  %v923_v50 = vpop.permute.xlu1 %922 }
 0x482   :  { %3035 = vmatprep.mubr.msk.bf16.mxu1 %vm3419_vm0, %v3418_v1  ;;  %v928_v53 = vsel %vm244_vm4, %v923_v50, 0 }
 0x483   :  { %v699_v46 = vpack.c.bf16 %v698_v42, %v698_v42 }
 0x484   :  { %v3341_v47 = vpop.eup %3340 }
 0x485   :  { %v809_v49 = vmul.f32 %v3341_v47, %v3664_v0  ;;  %v3343_v52 = vpop.eup %3342  ;;  %v1034_v55 = vpop.permute.xlu1 %1033 }
 0x486   :  { %v920_v54 = vmul.f32 %v3343_v52, %v3668_v4  ;;  %v1039_v58 = vsel %vm244_vm4, %v1034_v55, 0 }
 0x487   :  { %v810_v51 = vpack.c.bf16 %v809_v49, %v809_v49 }
 0x488   :  { %v921_v56 = vpack.c.bf16 %v920_v54, %v920_v54 }
 0x491   :  { %v1029_v41 = vpop.xlane.xlu0 %1028 }
 0x492   :  { %3344 = vrcp.f32 %v1029_v41 }
 0x495   :  { %v701_v43 = vpop.permute.xlu0 %700 }
 0x496   :  { %v706_v44 = vsel %vm244_vm4, %v701_v43, 0 }
 0x497   :  { %3034 = vmatpush3.bf16.msra.mxu1 %v706_v44 }
 0x498   :  { %3045 = vmatprep.subr.bf16.mxu1 %v3418_v1 }
 0x49a   :  { %3036 = vmatmul.mubr.msk.bf16.vlgmr.msra.gmra.mrb[20].mxu1 %vm179_vm3, %v699_v46 }
 0x49b   :  { %3046 = vmatpush3.bf16.msra.mxu1 %v817_v48  ;;  %3047 = vmatprep.mubr.msk.bf16.mxu1 %vm3419_vm0, %v3418_v1 }
 0x49c   :  { %3057 = vmatprep.subr.bf16.mxu1 %v3418_v1  ;;  %v3345_v57 = vpop.eup %3344 }
 0x49d   :  { %v1031_v59 = vmul.f32 %v3345_v57, %v3679_v13 }
 0x49f   :  { %v1032_v60 = vpack.c.bf16 %v1031_v59, %v1031_v59 }
 0x4a2   :  { %3048 = vmatmul.mubr.msk.bf16.vlgmr.msra.gmra.mrb[24].mxu1 %vm179_vm3, %v810_v51 }
 0x4a3   :  { %3058 = vmatpush3.bf16.msra.mxu1 %v928_v53  ;;  %3059 = vmatprep.mubr.msk.bf16.mxu1 %vm3419_vm0, %v3418_v1  ;;  %v1101_v53 = vlaneseq }
 0x4a4   :  { %3069 = vmatprep.subr.bf16.mxu1 %v3418_v1 }
 0x4a5   :  { %v3752_v54 = vshrl.u32 %v1101_v53, 7 }
 0x4a7   :  { %v1103_v55 = vsub.s32 0, %v3752_v54 }
 0x4aa   :  { %3060 = vmatmul.mubr.msk.bf16.vlgmr.msra.gmra.mrb[28].mxu1 %vm179_vm3, %v921_v56  ;;  %v3758_v56 = vld [vmem:[%s4143_s9] sm:$0x3f] }
 0x4ab   :  { %3070 = vmatpush3.bf16.msra.mxu1 %v1039_v58  ;;  %3071 = vmatprep.mubr.msk.bf16.mxu1 %vm3419_vm0, %v3418_v1  ;;  %v1104_v57 = vrot.slane %v3758_v56, %v1103_v55 }
 0x4ac   :  { %3083 = vmatprep.subr.bf16.mxu1 %v3418_v1 }
 0x4b2   :  { %3072 = vmatmul.mubr.msk.bf16.vlgmr.msra.gmra.mrb[32].mxu1 %vm179_vm3, %v1032_v60 }
 0x4b3   :  { %3087 = vmatprep.mubr.msk.bf16.mxu1 %vm3419_vm0, %v3418_v1 }
 0x517   :  { %v282_v19 = vpop.f32.mrb[4].mxu1 }
 0x518   :  { %v2989_v61 = vpop.f32.mrb[5].mxu1 }
 0x519   :  { %v285_v62 = vpop.f32.mrb[6].mxu1 }
 0x51a   :  { %v2990_v63 = vpop.f32.mrb[7].mxu1 }
 0x51f   :  { %v393_v2 = vpop.f32.mrb[8].mxu1 }
 0x520   :  { %v3001_v0 = vpop.f32.mrb[9].mxu1 }
 0x521   :  { %v396_v3 = vpop.f32.mrb[10].mxu1 }
 0x522   :  { %v3002_v4 = vpop.f32.mrb[11].mxu1 }
 0x527   :  { %v504_v5 = vpop.f32.mrb[12].mxu1 }
 0x528   :  { %v3013_v6 = vpop.f32.mrb[13].mxu1 }
 0x529   :  { %v507_v7 = vpop.f32.mrb[14].mxu1 }
 0x52a   :  { %v3014_v8 = vpop.f32.mrb[15].mxu1 }
 0x554   :  { %v615_v9 = vpop.f32.mrb[16].mxu1 }
 0x555   :  { %v3025_v12 = vpop.f32.mrb[17].mxu1 }
 0x556   :  { %v618_v13 = vpop.f32.mrb[18].mxu1 }
 0x557   :  { %v3026_v14 = vpop.f32.mrb[19].mxu1 }
 0x56d   :  { %v742_v15 = vpop.f32.mrb[20].mxu1 }
 0x56e   :  { %v3037_v16 = vpop.f32.mrb[21].mxu1 }
 0x56f   :  { %v745_v17 = vpop.f32.mrb[22].mxu1  ;;  %v3298_v16 = vld [vmem:[%s4142_s8] sm:$0xff]  }
 0x570   :  { %v3038_v18 = vpop.f32.mrb[23].mxu1  ;;  %v3299_v17 = vld [vmem:[%s4142_s8 + $0x8] sm:$0xff]  }
 0x575   :  { %v853_v20 = vpop.f32.mrb[24].mxu1 }
 0x576   :  { %v3260_v23 = vpack.i.bf16 %v853_v20, %v393_v2  ;;  %v3049_v22 = vpop.f32.mrb[25].mxu1 }
 0x577   :  { %v856_v24 = vpop.f32.mrb[26].mxu1 }
 0x578   :  { %3261 = vrot.lane.b32.xlu1 %v3260_v23, %s3431_s25  ;;  %v3050_v25 = vpop.f32.mrb[27].mxu1 }
 0x579   :  { %v1192_v25 = vsub.s32 2, %v3752_v54 }
 0x57b   :  { %v1193_v26 = vrot.slane %v3758_v56, %v1192_v25 }
 0x57d   :  { %v964_v27 = vpop.f32.mrb[28].mxu1 }
 0x57e   :  { %v3265_v28 = vpack.i.bf16 %v964_v27, %v504_v5  ;;  %v3061_v29 = vpop.f32.mrb[29].mxu1  ;;  %v1198_v27 = vsub.s32 3, %v3752_v54 }
 0x57f   :  { %v967_v30 = vpop.f32.mrb[30].mxu1 }
 0x580   :  { %3266 = vrot.lane.b32.xlu1 %v3265_v28, %s3432_s28  ;;  %v3062_v31 = vpop.f32.mrb[31].mxu1 }
 0x585   :  { %v1075_v32 = vpop.f32.mrb[32].mxu1 }
 0x586   :  { %v3270_v33 = vpack.i.bf16 %v1075_v32, %v615_v9  ;;  %v3073_v34 = vpop.f32.mrb[33].mxu1 }
 0x587   :  { %v1078_v35 = vpop.f32.mrb[34].mxu1 }
 0x588   :  { %3271 = vrot.lane.b32.xlu0 %v3270_v33, %s4147_s29  ;;  %v3074_v36 = vpop.f32.mrb[35].mxu1  ;;  %v1199_v33 = vrot.slane %v3758_v56, %v1198_v27 }
 0x5ea   :  { %v3262_v37 = vpop.permute.xlu1 %3261 }
 0x5eb   :  { %v3264_v39 = vunpack.i.h.bf16 %v3262_v37  ;;  %v3263_v40 = vunpack.i.l.bf16 %v3262_v37 }
 0x5ed   :  { %v1093_v44 = vsel %vm179_vm3, %v742_v15, %v3264_v39  ;;  %v633_v45 = vsel %vm179_vm3, %v282_v19, %v3263_v40  ;;  %v3297_v15 = vld [vmem:[%s4140_s6 + $0x8] sm:$0xff]   ;;  %v3301_v39 = vld [vmem:[%s4142_s8 + $0x18] sm:$0xff]   ;;  %v2800_v40 = vld [vmem:[%s4141_s7] ss:$0 sm:$0xff] }
 0x5f2   :  { %v3267_v38 = vpop.permute.xlu1 %3266 }
 0x5f3   :  { %v3269_v41 = vunpack.i.h.bf16 %v3267_v38  ;;  %v3268_v42 = vunpack.i.l.bf16 %v3267_v38  ;;  %v3300_v38 = vld [vmem:[%s4142_s8 + $0x10] sm:$0xff]  }
 0x5f5   :  { %v1094_v48 = vsel %vm60_vm1, %v1093_v44, %v3269_v41  ;;  %v634_v49 = vsel %vm60_vm1, %v633_v45, %v3268_v42 }
 0x5fa   :  { %v3272_v43 = vpop.permute.xlu0 %3271 }
 0x5fb   :  { %v3274_v46 = vunpack.i.h.bf16 %v3272_v43  ;;  %v3273_v47 = vunpack.i.l.bf16 %v3272_v43 }
 0x5fd   :  { %v1095_v50 = vsel %vm635_vm5, %v1094_v48, %v3274_v46  ;;  %v636_v51 = vsel %vm635_vm5, %v634_v49, %v3273_v47 }
 0x5fe   :  { %v1096_v52 = vpack.c.bf16 %v1095_v50, %v636_v51  ;;  %v1283_v50 = vsub.s32 1, %v3752_v54 }
 0x600   :  { %3080 = vmatmul.mubr.msk.bf16.vlgmr.msra.gmra.mrb[36].mxu0 %vm130_vm2, %v1096_v52  ;;  %v1284_v51 = vrot.slane %v3758_v56, %v1283_v50 }
 0x601   :  { %3099 = vmatprep.mubr.msk.bf16.mxu0 %vm3419_vm0, %v3418_v1  ;;  %3092 = vmatpush3.bf16.msra.mxu0 %v3298_v16 }
 0x602   :  { %3093 = vmatprep.subr.bf16.mxu0 %v3418_v1 }
 0x605   :  { %3094 = vmatpush3.bf16.msra.mxu0 %v3299_v17 }
 0x606   :  { %3095 = vmatprep.subr.bf16.mxu0 %v3418_v1 }
 0x609   :  { %3096 = vmatpush3.bf16.msra.mxu0 %v3300_v38 }
 0x60a   :  { %3097 = vmatprep.subr.bf16.mxu0 %v3418_v1 }
 0x60d   :  { %3098 = vmatpush3.bf16.msra.mxu0 %v3301_v39 }
 0x60e   :  { %3117 = vmatprep.subr.bf16.mxu0 %v3418_v1 }
 0x6d3   :  { %v1154_v58 = vpop.f32.mrb[36].mxu0 }
 0x6d4   :  { %v1155_v59 = vadd.f32 %v1154_v58, %v1104_v57  ;;  %v3081_v60 = vpop.f32.mrb[37].mxu0 }
 0x6d5   :  { %v1157_v19 = vpop.f32.mrb[38].mxu0 }
 0x6d6   :  { %v1158_v61 = vadd.f32 %v1157_v19, %v1104_v57  ;;  %v3082_v62 = vpop.f32.mrb[39].mxu0  ;;  %v1161_v63 = vadd.f32 %v1155_v59, %v3530_v10 }
 0x6d8   :  { %v1163_v2 = vsel %vm130_vm2, %v1161_v63, 0.0  ;;  %v1162_v0 = vadd.f32 %v1158_v61, %v3532_v11  ;;  %v3296_v11 = vld [vmem:[%s4140_s6] sm:$0xff]  }
 0x6d9   :  { %1164 = vadd.xlane.f32.xlu1 %v1163_v2  ;;  %3084 = vmatpush3.bf16.msra.mxu1 %v3296_v11 }
 0x6da   :  { %v1166_v3 = vsel %vm130_vm2, %v1162_v0, 0.0  ;;  %3085 = vmatprep.subr.bf16.mxu1 %v3418_v1 }
 0x6db   :  { %1167 = vadd.xlane.f32.xlu0 %v1166_v3 }
 0x6dd   :  { %3086 = vmatpush3.bf16.msra.mxu1 %v3297_v15 }
 0x6de   :  { %3103 = vmatprep.subr.bf16.mxu1 %v3418_v1 }
 0x766   :  { %v1165_v4 = vpop.xlane.xlu1 %1164 }
 0x767   :  { %v1170_v5 = vmul.f32 0.03125, %v1165_v4 }
 0x768   :  { %v1168_v6 = vpop.xlane.xlu0 %1167 }
 0x769   :  { %v1172_v7 = vsub.f32 %v1161_v63, %v1170_v5  ;;  %v1171_v8 = vmul.f32 0.03125, %v1168_v6 }
 0x76b   :  { %v1173_v9 = vsub.f32 %v1162_v0, %v1171_v8  ;;  %v1174_v12 = vmul.f32 %v1172_v7, %v1172_v7 }
 0x76d   :  { %v1176_v13 = vsel %vm130_vm2, %v1174_v12, 0.0  ;;  %v1175_v14 = vmul.f32 %v1173_v9, %v1173_v9 }
 0x76e   :  { %1177 = vadd.xlane.f32.xlu0 %v1176_v13  ;;  %v3302_v13 = vld [vmem:[%s4137_s3 + $0x10] sm:$0xff]  }
 0x76f   :  { %v1179_v10 = vsel %vm130_vm2, %v1175_v14, 0.0  ;;  %v3303_v14 = vld [vmem:[%s4137_s3 + $0x18] sm:$0xff]   ;;  %s3434_s3 = smov [#allocation2]  }
 0x770   :  { %1180 = vadd.xlane.f32.xlu1 %v1179_v10  ;;  %s2766_s0 = sshll.u32 %s3434_s3, 4  ;;  %s2767_s0 = int_to_ptr.vmem [resolvable:$true] %s2766_s0 }
 0x771   :  { %p3399_p1 = scmp.lt.s32.totalorder %s2767_s0, %s2767_s0 }
 0x7fb   :  { %v1178_v18 = vpop.xlane.xlu0 %1177 }
 0x7fc   :  { %v1182_v20 = vmul.f32 0.03125, %v1178_v18 }
 0x7fd   :  { %v1181_v21 = vpop.xlane.xlu1 %1180 }
 0x7fe   :  { %v1184_v23 = vadd.f32 1e-05, %v1182_v20  ;;  %v1183_v22 = vmul.f32 0.03125, %v1181_v21  ;;  %v1384_v20 = vsub.s32 4, %v3752_v54 }
 0x800   :  { %3346 = vrsqrt.f32 %v1184_v23  ;;  %v1185_v24 = vadd.f32 1e-05, %v1183_v22  ;;  %v1385_v21 = vrot.slane %v3758_v56, %v1384_v20  ;;  %v1390_v23 = vsub.s32 5, %v3752_v54  ;;  %v2864_v54 = vld [vmem:[%s4145_s11] ss:$0 sm:$0xff] }
 0x802   :  { %3348 = vrsqrt.f32 %v1185_v24 }
 0x80a   :  { %v3347_v28 = vpop.eup %3346 }
 0x80b   :  { %v1188_v29 = vmul.f32 %v3347_v28, %v1172_v7 }
 0x80c   :  { %v3349_v30 = vpop.eup %3348 }
 0x80d   :  { %v1194_v31 = vmul.f32 %v1193_v26, %v1188_v29  ;;  %v1189_v32 = vmul.f32 %v3349_v30, %v1173_v9  ;;  %v1391_v30 = vrot.slane %v3758_v56, %v1390_v23 }
 0x80f   :  { %v1195_v34 = vmul.f32 %v1193_v26, %v1189_v32  ;;  %v1200_v35 = vadd.f32 %v1199_v33, %v1194_v31 }
 0x811   :  { %v1201_v36 = vadd.f32 %v1199_v33, %v1195_v34 }
 0x813   :  { %v1202_v37 = vpack.c.bf16 %v1201_v36, %v1200_v35 }
 0x815   :  { %3088 = vmatmul.mubr.msk.bf16.vlgmr.msra.gmra.mrb[36].mxu1 %vm130_vm2, %v1202_v37 }
 0x816   :  { %3107 = vmatprep.mubr.msk.bf16.mxu1 %vm3419_vm0, %v3418_v1  ;;  %3104 = vmatpush3.bf16.msra.mxu1 %v3302_v13 }
 0x817   :  { %3105 = vmatprep.subr.bf16.mxu1 %v3418_v1 }
 0x81a   :  { %3106 = vmatpush3.bf16.msra.mxu1 %v3303_v14 }
 0x81b   :  { %3111 = vmatprep.subr.bf16.mxu1 %v3418_v1 }
 0x8e8   :  { %v1263_v41 = vpop.f32.mrb[36].mxu1 }
 0x8e9   :  { %v1264_v42 = vadd.f32 %v2800_v40, %v1263_v41  ;;  %v3089_v43 = vpop.f32.mrb[37].mxu1 }
 0x8ea   :  { %v1266_v44 = vpop.f32.mrb[38].mxu1 }
 0x8eb   :  { %v1267_v45 = vadd.f32 %v2800_v40, %v1266_v44  ;;  %v3090_v46 = vpop.f32.mrb[39].mxu1  ;;  %v1270_v47 = vmax.f32 %v1264_v42, 0.0 }
 0x8ed   :  { %v1271_v48 = vmax.f32 %v1267_v45, 0.0 }
 0x8ef   :  { %v1272_v49 = vpack.c.bf16 %v1271_v48, %v1270_v47 }
 0x8f1   :  { %3100 = vmatmul.mubr.msk.bf16.vlgmr.msra.gmra.mrb[40].mxu0 %vm1309_vm6, %v1272_v49 }
 0x8f2   :  { %3119 = vmatprep.mubr.msk.bf16.mxu0 %vm3419_vm0, %v3418_v1 }
 0x9c4   :  { %v1347_v52 = vpop.f32.mrb[40].mxu0 }
 0x9c5   :  { %v1348_v53 = vadd.f32 %v1347_v52, %v1284_v51  ;;  %v3101_v57 = vpop.f32.mrb[41].mxu0 }
 0x9c6   :  { %v1350_v58 = vpop.f32.mrb[42].mxu0 }
 0x9c7   :  { %v1351_v59 = vadd.f32 %v1350_v58, %v1284_v51  ;;  %v3102_v60 = vpop.f32.mrb[43].mxu0  ;;  %v1354_v19 = vadd.f32 %v1348_v53, %v1200_v35  ;;  %v2815_v35 = vld [vmem:[%s4138_s4 + $0x1] ss:$0 sm:$0xff]  ;;  %s3394_s4 = scalar_lea.vmem %s2767_s0, 32 }
 0x9c8   :  { %p3395_p0 = scmp.ne.s32.totalorder %s2767_s0, %s3394_s4  ;;  %p3400_p2 = scmp.lt.s32.totalorder %s3394_s4, %s3394_s4 }
 0x9c9   :  { %v1356_v61 = vsel %vm130_vm2, %v1354_v19, 0.0  ;;  %v1355_v62 = vadd.f32 %v1351_v59, %v1201_v36 }
 0x9ca   :  { %1357 = vadd.xlane.f32.xlu0 %v1356_v61  ;;  %p3401_p3 = por %p3400_p2, %p3399_p1 }
 0x9cb   :  { %v1359_v63 = vsel %vm130_vm2, %v1355_v62, 0.0 }
 0x9cc   :  { %1360 = vadd.xlane.f32.xlu1 %v1359_v63  ;;  %p3402_p4 = pnand %p3401_p3, %p3395_p0 }
 0xa57   :  { %v1358_v2 = vpop.xlane.xlu0 %1357 }
 0xa58   :  { %v1362_v0 = vmul.f32 0.03125, %v1358_v2 }
 0xa59   :  { %v1361_v3 = vpop.xlane.xlu1 %1360 }
 0xa5a   :  { %v1364_v4 = vsub.f32 %v1354_v19, %v1362_v0  ;;  %v1363_v5 = vmul.f32 0.03125, %v1361_v3 }
 0xa5c   :  { %v1365_v6 = vsub.f32 %v1355_v62, %v1363_v5  ;;  %v1366_v7 = vmul.f32 %v1364_v4, %v1364_v4 }
 0xa5e   :  { %v1368_v8 = vsel %vm130_vm2, %v1366_v7, 0.0  ;;  %v1367_v9 = vmul.f32 %v1365_v6, %v1365_v6 }
 0xa5f   :  { %1369 = vadd.xlane.f32.xlu0 %v1368_v8 }
 0xa60   :  { %v1371_v12 = vsel %vm130_vm2, %v1367_v9, 0.0 }
 0xa61   :  { %1372 = vadd.xlane.f32.xlu1 %v1371_v12 }
 0xaec   :  { %v1370_v10 = vpop.xlane.xlu0 %1369 }
 0xaed   :  { %v1374_v11 = vmul.f32 0.03125, %v1370_v10 }
 0xaee   :  { %v1373_v15 = vpop.xlane.xlu1 %1372 }
 0xaef   :  { %v1376_v16 = vadd.f32 1e-05, %v1374_v11  ;;  %v1375_v17 = vmul.f32 0.03125, %v1373_v15 }
 0xaf1   :  { %3350 = vrsqrt.f32 %v1376_v16  ;;  %v1377_v18 = vadd.f32 1e-05, %v1375_v17 }
 0xaf3   :  { %3352 = vrsqrt.f32 %v1377_v18 }
 0xafb   :  { %v3351_v22 = vpop.eup %3350 }
 0xafc   :  { %v1380_v24 = vmul.f32 %v3351_v22, %v1364_v4 }
 0xafd   :  { %v3353_v26 = vpop.eup %3352 }
 0xafe   :  { %v1386_v28 = vmul.f32 %v1385_v21, %v1380_v24  ;;  %v1381_v29 = vmul.f32 %v3353_v26, %v1365_v6 }
 0xb00   :  { %v1387_v31 = vmul.f32 %v1385_v21, %v1381_v29  ;;  %v3834_v32 = vadd.f32 %v1391_v30, %v1386_v28 }
 0xb02   :  { %v3836_v33 = vadd.f32 %v1391_v30, %v1387_v31 }
 0xb04   :  { %v1396_v34 = vpack.c.bf16 %v3836_v33, %v3834_v32 }
 0xb06   :  { %3108 = vmatmul.mubr.msk.bf16.vlgmr.msra.gmra.mrb[40].mxu1 %vm130_vm2, %v1396_v34 }
 0xb07   :  { %3113 = vmatprep.mubr.msk.bf16.mxu1 %vm3419_vm0, %v3418_v1 }
 0xbd9   :  { %v1459_v36 = vpop.f32.mrb[40].mxu1 }
 0xbda   :  { %v1460_v37 = vadd.f32 %v2815_v35, %v1459_v36  ;;  %v3109_v56 = vpop.f32.mrb[41].mxu1 }
 0xbdb   :  { %v1462_v38 = vpop.f32.mrb[42].mxu1 }
 0xbdc   :  { %v3846_v39 = vpack.c.bf16 %v1460_v37, %v1460_v37  ;;  %v3110_v40 = vpop.f32.mrb[43].mxu1  ;;  %v1463_v41 = vadd.f32 %v2815_v35, %v1462_v38 }
 0xbde   :  { %1579 = vrot.lane.b32.xlu1 %v3846_v39, %s3423_s17  ;;  %1468 = vrot.lane.b32.xlu0 %v3846_v39, %s3421_s15  ;;  %v3860_v42 = vpack.c.bf16 %v1463_v41, %v1463_v41 }
 0xbe2   :  { %1577 = vrot.lane.b32.xlu1 %v3846_v39, %s3420_s2  ;;  %1690 = vrot.lane.b32.xlu0 %v3846_v39, %s3422_s16 }
 0xbe6   :  { %1688 = vrot.lane.b32.xlu1 %v3846_v39, %s3425_s19  ;;  %1801 = vrot.lane.b32.xlu0 %v3846_v39, %s3424_s18 }
 0xbea   :  { %1799 = vrot.lane.b32.xlu1 %v3846_v39, %s3426_s20  ;;  %1927 = vrot.lane.b32.xlu0 %v3860_v42, %s3421_s15 }
 0xbee   :  { %2038 = vrot.lane.b32.xlu1 %v3860_v42, %s3423_s17  ;;  %2036 = vrot.lane.b32.xlu0 %v3860_v42, %s3420_s2  ;;  %s4148_s17 = smov 24  }
 0xbf2   :  { %2149 = vrot.lane.b32.xlu1 %v3860_v42, %s3422_s16  ;;  %2147 = vrot.lane.b32.xlu0 %v3860_v42, %s3425_s19 }
 0xbf6   :  { %2260 = vrot.lane.b32.xlu1 %v3860_v42, %s3424_s18  ;;  %2258 = vrot.lane.b32.xlu0 %v3860_v42, %s3426_s20 }
 0xc50   :  { %v1469_v43 = vpop.permute.xlu0 %1468  ;;  %v1580_v45 = vpop.permute.xlu1 %1579 }
 0xc51   :  { %v1474_v44 = vsel %vm179_vm3, %v1469_v43, 0  ;;  %v1585_v46 = vsel %vm179_vm3, %v1580_v45, 0 }
 0xc52   :  { %3112 = vmatpush3.bf16.xpose.msra.mxu1 %v1474_v44 }
 0xc53   :  { %3123 = vmatprep.subr.bf16.mxu1 %v3418_v1 }
 0xc54   :  { %v1691_v47 = vpop.permute.xlu0 %1690  ;;  %v1578_v48 = vpop.permute.xlu1 %1577 }
 0xc55   :  { %v1696_v49 = vsel %vm179_vm3, %v1691_v47, 0 }
 0xc58   :  { %v1802_v51 = vpop.permute.xlu0 %1801  ;;  %v1689_v52 = vpop.permute.xlu1 %1688 }
 0xc59   :  { %3114 = vmatmul.mubr.msk.bf16.vlgmr.msra.gmra.mrb[44].mxu1 %vm179_vm3, %v3846_v39  ;;  %v1807_v53 = vsel %vm179_vm3, %v1802_v51, 0 }
 0xc5a   :  { %3124 = vmatpush3.bf16.xpose.msra.mxu1 %v1585_v46  ;;  %3125 = vmatprep.mubr.msk.bf16.mxu1 %vm3419_vm0, %v3418_v1 }
 0xc5b   :  { %3135 = vmatprep.subr.bf16.mxu1 %v3418_v1 }
 0xc5c   :  { %v1928_v57 = vpop.permute.xlu0 %1927  ;;  %v1800_v58 = vpop.permute.xlu1 %1799 }
 0xc5d   :  { %v1933_v59 = vsel %vm179_vm3, %v1928_v57, 0 }
 0xc60   :  { %v2039_v60 = vpop.permute.xlu1 %2038  ;;  %v2037_v62 = vpop.permute.xlu0 %2036 }
 0xc61   :  { %3126 = vmatmul.mubr.msk.bf16.vlgmr.msra.gmra.mrb[48].mxu1 %vm179_vm3, %v1578_v48  ;;  %v2044_v19 = vsel %vm179_vm3, %v2039_v60, 0 }
 0xc62   :  { %3136 = vmatpush3.bf16.xpose.msra.mxu1 %v1696_v49  ;;  %3137 = vmatprep.mubr.msk.bf16.mxu1 %vm3419_vm0, %v3418_v1 }
 0xc63   :  { %3147 = vmatprep.subr.bf16.mxu1 %v3418_v1 }
 0xc64   :  { %v2150_v61 = vpop.permute.xlu1 %2149  ;;  %v2148_v0 = vpop.permute.xlu0 %2147 }
 0xc65   :  { %v2155_v63 = vsel %vm179_vm3, %v2150_v61, 0 }
 0xc68   :  { %v2261_v2 = vpop.permute.xlu1 %2260  ;;  %v2259_v4 = vpop.permute.xlu0 %2258 }
 0xc69   :  { %3138 = vmatmul.mubr.msk.bf16.vlgmr.msra.gmra.mrb[52].mxu1 %vm179_vm3, %v1689_v52  ;;  %v2266_v3 = vsel %vm179_vm3, %v2261_v2, 0 }
 0xc6a   :  { %3148 = vmatpush3.bf16.xpose.msra.mxu1 %v1807_v53  ;;  %3149 = vmatprep.mubr.msk.bf16.mxu1 %vm3419_vm0, %v3418_v1 }
 0xc6b   :  { %3159 = vmatprep.subr.bf16.mxu1 %v3418_v1 }
 0xc71   :  { %3150 = vmatmul.mubr.msk.bf16.vlgmr.msra.gmra.mrb[56].mxu1 %vm179_vm3, %v1800_v58 }
 0xc72   :  { %3160 = vmatpush3.bf16.xpose.msra.mxu1 %v1933_v59  ;;  %3161 = vmatprep.mubr.msk.bf16.mxu1 %vm3419_vm0, %v3418_v1 }
 0xc73   :  { %3171 = vmatprep.subr.bf16.mxu1 %v3418_v1 }
 0xc79   :  { %3162 = vmatmul.mubr.msk.bf16.vlgmr.msra.gmra.mrb[60].mxu1 %vm179_vm3, %v3860_v42 }
 0xc7a   :  { %3172 = vmatpush3.bf16.xpose.msra.mxu1 %v2044_v19  ;;  %3173 = vmatprep.mubr.msk.bf16.mxu1 %vm3419_vm0, %v3418_v1 }
 0xc7b   :  { %3183 = vmatprep.subr.bf16.mxu1 %v3418_v1 }
 0xc81   :  { %3174 = vmatmul.mubr.msk.bf16.vlgmr.msra.gmra.mrb[64].mxu1 %vm179_vm3, %v2037_v62 }
 0xc82   :  { %3184 = vmatpush3.bf16.xpose.msra.mxu1 %v2155_v63  ;;  %3185 = vmatprep.mubr.msk.bf16.mxu1 %vm3419_vm0, %v3418_v1 }
 0xc83   :  { %3195 = vmatprep.subr.bf16.mxu1 %v3418_v1 }
 0xc89   :  { %3186 = vmatmul.mubr.msk.bf16.vlgmr.msra.gmra.mrb[68].mxu1 %vm179_vm3, %v2148_v0 }
 0xc8a   :  { %3196 = vmatpush3.bf16.xpose.msra.mxu1 %v2266_v3  ;;  %3197 = vmatprep.mubr.msk.bf16.mxu1 %vm3419_vm0, %v3418_v1 }
 0xc8b   :  { %3207 = vmatprep.subr.bf16.mxu1 %v3418_v1 }
 0xc91   :  { %3198 = vmatmul.mubr.msk.bf16.vlgmr.msra.gmra.mrb[72].mxu1 %vm179_vm3, %v2259_v4 }
 0xc92   :  { %3211 = vmatprep.mubr.msk.bf16.mxu1 %vm3419_vm0, %v3418_v1 }
 0xd2c   :  { %v1510_v5 = vpop.f32.mrb[44].mxu1 }
 0xd2d   :  { %v1516_v6 = vmul.f32 0.35355338, %v1510_v5  ;;  %v3115_v7 = vpop.f32.mrb[45].mxu1 }
 0xd2e   :  { %v1513_v8 = vpop.f32.mrb[46].mxu1 }
 0xd2f   :  { %v3116_v9 = vpop.f32.mrb[47].mxu1  ;;  %v1517_v12 = vsel %vm179_vm3, %v1516_v6, -inf }
 0xd30   :  { %1518 = vmax.xlane.f32.xlu1 %v1517_v12 }
 0xd34   :  { %v1621_v13 = vpop.f32.mrb[48].mxu1 }
 0xd35   :  { %v1627_v14 = vmul.f32 0.35355338, %v1621_v13  ;;  %v3127_v10 = vpop.f32.mrb[49].mxu1 }
 0xd36   :  { %v1624_v11 = vpop.f32.mrb[50].mxu1 }
 0xd37   :  { %v3128_v15 = vpop.f32.mrb[51].mxu1  ;;  %v1628_v16 = vsel %vm179_vm3, %v1627_v14, -inf }
 0xd38   :  { %1629 = vmax.xlane.f32.xlu0 %v1628_v16 }
 0xd3c   :  { %v1732_v17 = vpop.f32.mrb[52].mxu1 }
 0xd3d   :  { %v1738_v18 = vmul.f32 0.35355338, %v1732_v17  ;;  %v3139_v21 = vpop.f32.mrb[53].mxu1 }
 0xd3e   :  { %v1735_v22 = vpop.f32.mrb[54].mxu1 }
 0xd3f   :  { %v3140_v24 = vpop.f32.mrb[55].mxu1  ;;  %v1739_v26 = vsel %vm179_vm3, %v1738_v18, -inf }
 0xd40   :  { %1740 = vmax.xlane.f32.xlu0 %v1739_v26 }
 0xd44   :  { %v1843_v28 = vpop.f32.mrb[56].mxu1 }
 0xd45   :  { %v1849_v29 = vmul.f32 0.35355338, %v1843_v28  ;;  %v3151_v30 = vpop.f32.mrb[57].mxu1 }
 0xd46   :  { %v1846_v31 = vpop.f32.mrb[58].mxu1 }
 0xd47   :  { %v3152_v34 = vpop.f32.mrb[59].mxu1  ;;  %v1850_v35 = vsel %vm179_vm3, %v1849_v29, -inf }
 0xd48   :  { %1851 = vmax.xlane.f32.xlu1 %v1850_v35 }
 0xd4c   :  { %v1969_v36 = vpop.f32.mrb[60].mxu1 }
 0xd4d   :  { %v1975_v37 = vmul.f32 0.35355338, %v1969_v36  ;;  %v3163_v56 = vpop.f32.mrb[61].mxu1 }
 0xd4e   :  { %v1972_v38 = vpop.f32.mrb[62].mxu1 }
 0xd4f   :  { %v3164_v40 = vpop.f32.mrb[63].mxu1  ;;  %v1976_v41 = vsel %vm179_vm3, %v1975_v37, -inf }
 0xd50   :  { %1977 = vmax.xlane.f32.xlu0 %v1976_v41 }
 0xd54   :  { %v2080_v43 = vpop.f32.mrb[64].mxu1 }
 0xd55   :  { %v3925_v44 = vmul.f32 0.35355338, %v2080_v43  ;;  %v3175_v45 = vpop.f32.mrb[65].mxu1 }
 0xd56   :  { %v2083_v46 = vpop.f32.mrb[66].mxu1 }
 0xd57   :  { %v3176_v47 = vpop.f32.mrb[67].mxu1  ;;  %v2087_v48 = vsel %vm179_vm3, %v3925_v44, -inf }
 0xd58   :  { %2088 = vmax.xlane.f32.xlu1 %v2087_v48 }
 0xd5c   :  { %v2191_v49 = vpop.f32.mrb[68].mxu1 }
 0xd5d   :  { %v2197_v51 = vmul.f32 0.35355338, %v2191_v49  ;;  %v3187_v52 = vpop.f32.mrb[69].mxu1 }
 0xd5e   :  { %v2194_v53 = vpop.f32.mrb[70].mxu1 }
 0xd5f   :  { %v3188_v57 = vpop.f32.mrb[71].mxu1  ;;  %v2198_v58 = vsel %vm179_vm3, %v2197_v51, -inf }
 0xd60   :  { %2199 = vmax.xlane.f32.xlu0 %v2198_v58 }
 0xd64   :  { %v2302_v59 = vpop.f32.mrb[72].mxu1 }
 0xd65   :  { %v3199_v60 = vpop.f32.mrb[73].mxu1  ;;  %v2308_v62 = vmul.f32 0.35355338, %v2302_v59 }
 0xd66   :  { %v2305_v19 = vpop.f32.mrb[74].mxu1 }
 0xd67   :  { %v3200_v61 = vpop.f32.mrb[75].mxu1  ;;  %v2309_v63 = vsel %vm179_vm3, %v2308_v62, -inf }
 0xd69   :  { %1640 = vrot.lane.b32.xlu1 %v3846_v39, %s3427_s21 }
 0xd76   :  { %1529 = vrot.lane.b32.xlu0 %v3846_v39, %s3428_s22 }
 0xd8d   :  { %2310 = vmax.xlane.f32.xlu1 %v2309_v63 }
 0xd9e   :  { %1751 = vrot.lane.b32.xlu1 %v3846_v39, %s3429_s23 }
 0xdbd   :  { %v1519_v2 = vpop.xlane.xlu1 %1518 }
 0xdbe   :  { %v1520_v0 = vsub.f32 %v1516_v6, %v1519_v2 }
 0xdc0   :  { %v1521_v3 = vmul.f32 1.442695, %v1520_v0 }
 0xdc2   :  { %3354 = vpow2.f32 %v1521_v3 }
 0xdc5   :  { %v1630_v4 = vpop.xlane.xlu0 %1629 }
 0xdc6   :  { %v1631_v5 = vsub.f32 %v1627_v14, %v1630_v4 }
 0xdc8   :  { %v1632_v7 = vmul.f32 1.442695, %v1631_v5 }
 0xdca   :  { %3356 = vpow2.f32 %v1632_v7 }
 0xdcc   :  { %v3937_v8 = vpop.eup %3354 }
 0xdcd   :  { %v1741_v9 = vpop.xlane.xlu0 %1740  ;;  %v1523_v12 = vsel %vm179_vm3, %v3937_v8, 0.0 }
 0xdce   :  { %v1742_v13 = vsub.f32 %v1738_v18, %v1741_v9  ;;  %1524 = vadd.xlane.f32.xlu0 %v1523_v12 }
 0xdd0   :  { %v1743_v10 = vmul.f32 1.442695, %v1742_v13 }
 0xdd2   :  { %3358 = vpow2.f32 %v1743_v10 }
 0xdd4   :  { %v3941_v11 = vpop.eup %3356 }
 0xdd5   :  { %v1852_v15 = vpop.xlane.xlu1 %1851  ;;  %v1634_v6 = vsel %vm179_vm3, %v3941_v11, 0.0 }
 0xdd6   :  { %v1853_v16 = vsub.f32 %v1849_v29, %v1852_v15  ;;  %1635 = vadd.xlane.f32.xlu1 %v1634_v6 }
 0xdd8   :  { %v1854_v14 = vmul.f32 1.442695, %v1853_v16 }
 0xdda   :  { %3360 = vpow2.f32 %v1854_v14 }
 0xddc   :  { %v3945_v17 = vpop.eup %3358 }
 0xddd   :  { %v1978_v21 = vpop.xlane.xlu0 %1977  ;;  %v1745_v22 = vsel %vm179_vm3, %v3945_v17, 0.0 }
 0xdde   :  { %v1979_v18 = vsub.f32 %v1975_v37, %v1978_v21  ;;  %1746 = vadd.xlane.f32.xlu0 %v1745_v22 }
 0xde0   :  { %v1980_v24 = vmul.f32 1.442695, %v1979_v18 }
 0xde2   :  { %3362 = vpow2.f32 %v1980_v24 }
 0xde4   :  { %v3949_v26 = vpop.eup %3360 }
 0xde5   :  { %v1856_v28 = vsel %vm179_vm3, %v3949_v26, 0.0  ;;  %v2089_v56 = vpop.xlane.xlu1 %2088 }
 0xde6   :  { %1857 = vadd.xlane.f32.xlu1 %v1856_v28  ;;  %v2090_v40 = vsub.f32 %v3925_v44, %v2089_v56 }
 0xde8   :  { %v2091_v43 = vmul.f32 1.442695, %v2090_v40 }
 0xdec   :  { %v3953_v29 = vpop.eup %3362 }
 0xded   :  { %v2200_v30 = vpop.xlane.xlu0 %2199  ;;  %v1982_v31 = vsel %vm179_vm3, %v3953_v29, 0.0 }
 0xdee   :  { %v2201_v34 = vsub.f32 %v2197_v51, %v2200_v30  ;;  %1983 = vadd.xlane.f32.xlu1 %v1982_v31 }
 0xdf0   :  { %v2202_v35 = vmul.f32 1.442695, %v2201_v34 }
 0xdf1   :  { %v1530_v36 = vpop.permute.xlu0 %1529 }
 0xdf2   :  { %3364 = vpow2.f32 %v2202_v35  ;;  %v1535_v37 = vsel %vm244_vm4, %v1530_v36, 0 }
 0xdf3   :  { %3118 = vmatpush3.bf16.msra.mxu0 %v1535_v37  ;;  %3366 = vpow2.f32 %v2091_v43 }
 0xdf4   :  { %1862 = vrot.lane.b32.xlu0 %v3846_v39, %s3430_s24  ;;  %3129 = vmatprep.subr.bf16.mxu0 %v3418_v1  ;;  %v1641_v39 = vpop.permute.xlu1 %1640 }
 0xdf5   :  { %v1646_v19 = vsel %vm244_vm4, %v1641_v39, 0 }
 0xdfc   :  { %v3961_v38 = vpop.eup %3364 }
 0xdfd   :  { %v2204_v41 = vsel %vm179_vm3, %v3961_v38, 0.0  ;;  %v3966_v45 = vpop.eup %3366 }
 0xdfe   :  { %2205 = vadd.xlane.f32.xlu1 %v2204_v41  ;;  %v2093_v46 = vsel %vm179_vm3, %v3966_v45, 0.0 }
 0xe13   :  { %2094 = vadd.xlane.f32.xlu0 %v2093_v46 }
 0xe1a   :  { %v2311_v47 = vpop.xlane.xlu1 %2310 }
 0xe1b   :  { %v2312_v48 = vsub.f32 %v2308_v62, %v2311_v47 }
 0xe1d   :  { %v2313_v49 = vmul.f32 1.442695, %v2312_v48 }
 0xe1e   :  { %v1752_v53 = vpop.permute.xlu1 %1751 }
 0xe1f   :  { %3368 = vpow2.f32 %v2313_v49  ;;  %v1757_v2 = vsel %vm244_vm4, %v1752_v53, 0 }
 0xe29   :  { %v3970_v51 = vpop.eup %3368  ;;  %2099 = vrot.lane.b32.xlu0 %v3860_v42, %s3427_s21 }
 0xe2a   :  { %v2315_v44 = vsel %vm179_vm3, %v3970_v51, 0.0 }
 0xe2b   :  { %2316 = vadd.xlane.f32.xlu1 %v2315_v44 }
 0xe2d   :  { %2210 = vrot.lane.b32.xlu0 %v3860_v42, %s3429_s23 }
 0xe31   :  { %2321 = vrot.lane.b32.xlu0 %v3860_v42, %s3430_s24 }
 0xe3c   :  { %1988 = vrot.lane.b32.xlu1 %v3860_v42, %s3428_s22 }
 0xe5b   :  { %v1525_v52 = vpop.xlane.xlu0 %1524 }
 0xe5c   :  { %3370 = vrcp.f32 %v1525_v52 }
 0xe63   :  { %v1636_v57 = vpop.xlane.xlu1 %1635 }
 0xe64   :  { %3372 = vrcp.f32 %v1636_v57 }
 0xe66   :  { %v3371_v58 = vpop.eup %3370 }
 0xe67   :  { %v1527_v59 = vmul.f32 %v3371_v58, %v3937_v8 }
 0xe69   :  { %v1528_v60 = vpack.c.bf16 %v1527_v59, %v1527_v59 }
 0xe6b   :  { %3120 = vmatmul.mubr.msk.bf16.vlgmr.msra.gmra.mrb[44].mxu0 %vm179_vm3, %v1528_v60  ;;  %v1747_v61 = vpop.xlane.xlu0 %1746 }
 0xe6c   :  { %3130 = vmatpush3.bf16.msra.mxu0 %v1646_v19  ;;  %3374 = vrcp.f32 %v1747_v61  ;;  %3131 = vmatprep.mubr.msk.bf16.mxu0 %vm3419_vm0, %v3418_v1 }
 0xe6d   :  { %3141 = vmatprep.subr.bf16.mxu0 %v3418_v1 }
 0xe6e   :  { %v3373_v42 = vpop.eup %3372 }
 0xe6f   :  { %v1638_v62 = vmul.f32 %v3373_v42, %v3941_v11  ;;  %v1863_v5 = vpop.permute.xlu0 %1862 }
 0xe70   :  { %v1868_v8 = vsel %vm244_vm4, %v1863_v5, 0 }
 0xe71   :  { %v1639_v63 = vpack.c.bf16 %v1638_v62, %v1638_v62 }
 0xe73   :  { %3132 = vmatmul.mubr.msk.bf16.vlgmr.msra.gmra.mrb[48].mxu0 %vm179_vm3, %v1639_v63  ;;  %v1858_v0 = vpop.xlane.xlu1 %1857 }
 0xe74   :  { %3142 = vmatpush3.bf16.msra.mxu0 %v1757_v2  ;;  %3376 = vrcp.f32 %v1858_v0  ;;  %3143 = vmatprep.mubr.msk.bf16.mxu0 %vm3419_vm0, %v3418_v1  ;;  %v3304_v0 = vld [vmem:[%s4139_s5 + $0x10] sm:$0xff]  }
 0xe75   :  { %3153 = vmatprep.subr.bf16.mxu0 %v3418_v1  ;;  %3208 = vmatpush3.bf16.msra.mxu1 %v3304_v0  ;;  %v3309_v0 = vld [vmem:[%s4142_s8 + $0x28] sm:$0xff]  }
 0xe76   :  { %v3375_v3 = vpop.eup %3374  ;;  %3209 = vmatprep.subr.bf16.mxu1 %v3418_v1 }
 0xe77   :  { %v1749_v4 = vmul.f32 %v3375_v3, %v3945_v17 }
 0xe79   :  { %v1750_v7 = vpack.c.bf16 %v1749_v4, %v1749_v4 }
 0xe7b   :  { %3144 = vmatmul.mubr.msk.bf16.vlgmr.msra.gmra.mrb[52].mxu0 %vm179_vm3, %v1750_v7  ;;  %v1984_v10 = vpop.xlane.xlu1 %1983 }
 0xe7c   :  { %3154 = vmatpush3.bf16.msra.mxu0 %v1868_v8  ;;  %3155 = vmatprep.mubr.msk.bf16.mxu0 %vm3419_vm0, %v3418_v1  ;;  %3378 = vrcp.f32 %v1984_v10  ;;  %v3305_v8 = vld [vmem:[%s4139_s5 + $0x18] sm:$0xff]  }
 0xe7d   :  { %3165 = vmatprep.subr.bf16.mxu0 %v3418_v1  ;;  %3210 = vmatpush3.bf16.msra.mxu1 %v3305_v8 }
 0xe7e   :  { %v3377_v9 = vpop.eup %3376  ;;  %3223 = vmatprep.subr.bf16.mxu1 %v3418_v1 }
 0xe7f   :  { %v1860_v12 = vmul.f32 %v3377_v9, %v3949_v26 }
 0xe81   :  { %v1861_v13 = vpack.c.bf16 %v1860_v12, %v1860_v12 }
 0xe83   :  { %3156 = vmatmul.mubr.msk.bf16.vlgmr.msra.gmra.mrb[56].mxu0 %vm179_vm3, %v1861_v13 }
 0xe84   :  { %3167 = vmatprep.mubr.msk.bf16.mxu0 %vm3419_vm0, %v3418_v1 }
 0xe86   :  { %v3379_v6 = vpop.eup %3378 }
 0xe87   :  { %v1986_v14 = vmul.f32 %v3379_v6, %v3953_v29 }
 0xe89   :  { %v1987_v18 = vpack.c.bf16 %v1986_v14, %v1986_v14 }
 0xe8b   :  { %v2206_v15 = vpop.xlane.xlu1 %2205 }
 0xea0   :  { %v2095_v11 = vpop.xlane.xlu0 %2094 }
 0xea1   :  { %3380 = vrcp.f32 %v2095_v11 }
 0xea2   :  { %3382 = vrcp.f32 %v2206_v15 }
 0xea4   :  { %v2100_v22 = vpop.permute.xlu0 %2099 }
 0xea5   :  { %v2105_v26 = vsel %vm244_vm4, %v2100_v22, 0 }
 0xea8   :  { %v2211_v29 = vpop.permute.xlu0 %2210 }
 0xea9   :  { %v2216_v34 = vsel %vm244_vm4, %v2211_v29, 0 }
 0xeab   :  { %v3381_v24 = vpop.eup %3380 }
 0xeac   :  { %v2097_v28 = vmul.f32 %v3381_v24, %v3966_v45  ;;  %v3383_v31 = vpop.eup %3382  ;;  %v2322_v36 = vpop.permute.xlu0 %2321 }
 0xead   :  { %v2208_v35 = vmul.f32 %v3383_v31, %v3961_v38  ;;  %v2327_v40 = vsel %vm244_vm4, %v2322_v36, 0 }
 0xeae   :  { %v2098_v30 = vpack.c.bf16 %v2097_v28, %v2097_v28 }
 0xeaf   :  { %v2209_v37 = vpack.c.bf16 %v2208_v35, %v2208_v35 }
 0xeb8   :  { %v2317_v16 = vpop.xlane.xlu1 %2316 }
 0xeb9   :  { %3384 = vrcp.f32 %v2317_v16 }
 0xebc   :  { %v1989_v17 = vpop.permute.xlu1 %1988 }
 0xebd   :  { %v1994_v21 = vsel %vm244_vm4, %v1989_v17, 0 }
 0xebe   :  { %3166 = vmatpush3.bf16.msra.mxu0 %v1994_v21 }
 0xebf   :  { %3177 = vmatprep.subr.bf16.mxu0 %v3418_v1 }
 0xec1   :  { %3168 = vmatmul.mubr.msk.bf16.vlgmr.msra.gmra.mrb[60].mxu0 %vm179_vm3, %v1987_v18 }
 0xec2   :  { %3178 = vmatpush3.bf16.msra.mxu0 %v2105_v26  ;;  %3179 = vmatprep.mubr.msk.bf16.mxu0 %vm3419_vm0, %v3418_v1 }
 0xec3   :  { %3189 = vmatprep.subr.bf16.mxu0 %v3418_v1  ;;  %v3385_v56 = vpop.eup %3384 }
 0xec4   :  { %v2319_v41 = vmul.f32 %v3385_v56, %v3970_v51 }
 0xec6   :  { %v2320_v43 = vpack.c.bf16 %v2319_v41, %v2319_v41 }
 0xec9   :  { %3180 = vmatmul.mubr.msk.bf16.vlgmr.msra.gmra.mrb[64].mxu0 %vm179_vm3, %v2098_v30 }
 0xeca   :  { %3190 = vmatpush3.bf16.msra.mxu0 %v2216_v34  ;;  %3191 = vmatprep.mubr.msk.bf16.mxu0 %vm3419_vm0, %v3418_v1 }
 0xecb   :  { %3201 = vmatprep.subr.bf16.mxu0 %v3418_v1 }
 0xed1   :  { %3192 = vmatmul.mubr.msk.bf16.vlgmr.msra.gmra.mrb[68].mxu0 %vm179_vm3, %v2209_v37 }
 0xed2   :  { %3202 = vmatpush3.bf16.msra.mxu0 %v2327_v40  ;;  %3203 = vmatprep.mubr.msk.bf16.mxu0 %vm3419_vm0, %v3418_v1 }
 0xed3   :  { %3215 = vmatprep.subr.bf16.mxu0 %v3418_v1 }
 0xed9   :  { %3204 = vmatmul.mubr.msk.bf16.vlgmr.msra.gmra.mrb[72].mxu0 %vm179_vm3, %v2320_v43  ;;  %v4051_v43 = vld [vmem:[%s4143_s9 + $0x8] sm:$0x3f] }
 0xeda   :  { %3219 = vmatprep.mubr.msk.bf16.mxu0 %vm3419_vm0, %v3418_v1 }
 0xf3e   :  { %v1571_v38 = vpop.f32.mrb[44].mxu0 }
 0xf3f   :  { %v3121_v45 = vpop.f32.mrb[45].mxu0 }
 0xf40   :  { %v1574_v46 = vpop.f32.mrb[46].mxu0 }
 0xf41   :  { %v3122_v39 = vpop.f32.mrb[47].mxu0 }
 0xf46   :  { %v1682_v47 = vpop.f32.mrb[48].mxu0 }
 0xf47   :  { %v3133_v48 = vpop.f32.mrb[49].mxu0 }
 0xf48   :  { %v1685_v49 = vpop.f32.mrb[50].mxu0 }
 0xf49   :  { %v3134_v44 = vpop.f32.mrb[51].mxu0 }
 0xf4e   :  { %v1793_v52 = vpop.f32.mrb[52].mxu0 }
 0xf4f   :  { %v3145_v53 = vpop.f32.mrb[53].mxu0 }
 0xf50   :  { %v1796_v57 = vpop.f32.mrb[54].mxu0 }
 0xf51   :  { %v3146_v51 = vpop.f32.mrb[55].mxu0 }
 0xf56   :  { %v1904_v58 = vpop.f32.mrb[56].mxu0 }
 0xf57   :  { %v3157_v59 = vpop.f32.mrb[57].mxu0 }
 0xf58   :  { %v1907_v60 = vpop.f32.mrb[58].mxu0 }
 0xf59   :  { %v3158_v19 = vpop.f32.mrb[59].mxu0 }
 0xf94   :  { %v2030_v61 = vpop.f32.mrb[60].mxu0 }
 0xf95   :  { %v3169_v42 = vpop.f32.mrb[61].mxu0 }
 0xf96   :  { %v2033_v62 = vpop.f32.mrb[62].mxu0 }
 0xf97   :  { %v3170_v63 = vpop.f32.mrb[63].mxu0 }
 0xf98   :  { %v3307_v63 = vld [vmem:[%s4140_s6 + $0x18] sm:$0xff]  }
 0xf9c   :  { %v2141_v2 = vpop.f32.mrb[64].mxu0 }
 0xf9d   :  { %v3275_v3 = vpack.i.bf16 %v2141_v2, %v1682_v47  ;;  %v3181_v4 = vpop.f32.mrb[65].mxu0  ;;  %v3308_v2 = vld [vmem:[%s4142_s8 + $0x20] sm:$0xff]  }
 0xf9e   :  { %v2144_v5 = vpop.f32.mrb[66].mxu0 }
 0xf9f   :  { %3276 = vrot.lane.b32.xlu1 %v3275_v3, %s3431_s25  ;;  %v3182_v7 = vpop.f32.mrb[67].mxu0 }
 0xfa4   :  { %v2252_v9 = vpop.f32.mrb[68].mxu0 }
 0xfa5   :  { %v3280_v12 = vpack.i.bf16 %v2252_v9, %v1793_v52  ;;  %v3193_v13 = vpop.f32.mrb[69].mxu0 }
 0xfa6   :  { %v2255_v10 = vpop.f32.mrb[70].mxu0  ;;  %v2481_v13 = vrot.slane %v4051_v43, %v1192_v25  ;;  %v3310_v25 = vld [vmem:[%s4142_s8 + $0x30] sm:$0xff]  }
 0xfa7   :  { %3281 = vrot.lane.b32.xlu0 %v3280_v12, %s3432_s28  ;;  %v3194_v11 = vpop.f32.mrb[71].mxu0 }
 0xfac   :  { %v2363_v15 = vpop.f32.mrb[72].mxu0 }
 0xfad   :  { %v3285_v6 = vpack.i.bf16 %v2363_v15, %v1904_v58  ;;  %v3205_v16 = vpop.f32.mrb[73].mxu0 }
 0xfae   :  { %v2366_v14 = vpop.f32.mrb[74].mxu0  ;;  %v2487_v16 = vrot.slane %v4051_v43, %v1198_v27  ;;  %v3311_v27 = vld [vmem:[%s4142_s8 + $0x38] sm:$0xff]  }
 0xfaf   :  { %3286 = vrot.lane.b32.xlu1 %v3285_v6, %s4148_s17  ;;  %v3206_v17 = vpop.f32.mrb[75].mxu0 }
0x1011   :  { %v3277_v21 = vpop.permute.xlu1 %3276 }
0x1012   :  { %v3279_v18 = vunpack.i.h.bf16 %v3277_v21  ;;  %v3278_v24 = vunpack.i.l.bf16 %v3277_v21 }
0x1014   :  { %v2381_v30 = vsel %vm179_vm3, %v2030_v61, %v3279_v18  ;;  %v1922_v31 = vsel %vm179_vm3, %v1571_v38, %v3278_v24  ;;  %v2393_v38 = vrot.slane %v4051_v43, %v1103_v55  ;;  %v2847_v18 = vld [vmem:[%s4141_s7 + $0x1] ss:$0 sm:$0xff] }
0x1019   :  { %v3282_v22 = vpop.permute.xlu0 %3281 }
0x101a   :  { %v3284_v26 = vunpack.i.h.bf16 %v3282_v22  ;;  %v3283_v28 = vunpack.i.l.bf16 %v3282_v22 }
0x101c   :  { %v2382_v36 = vsel %vm60_vm1, %v2381_v30, %v3284_v26  ;;  %v1923_v37 = vsel %vm60_vm1, %v1922_v31, %v3283_v28 }
0x1021   :  { %v3287_v29 = vpop.permute.xlu1 %3286 }
0x1022   :  { %v3289_v34 = vunpack.i.h.bf16 %v3287_v29  ;;  %v3288_v35 = vunpack.i.l.bf16 %v3287_v29 }
0x1024   :  { %v2383_v56 = vsel %vm635_vm5, %v2382_v36, %v3289_v34  ;;  %v1924_v40 = vsel %vm635_vm5, %v1923_v37, %v3288_v35  ;;  %v2575_v37 = vrot.slane %v4051_v43, %v1283_v50 }
0x1025   :  { %v2384_v41 = vpack.c.bf16 %v2383_v56, %v1924_v40 }
0x1027   :  { %3212 = vmatmul.mubr.msk.bf16.vlgmr.msra.gmra.mrb[76].mxu1 %vm130_vm2, %v2384_v41 }
0x1028   :  { %3231 = vmatprep.mubr.msk.bf16.mxu1 %vm3419_vm0, %v3418_v1  ;;  %3224 = vmatpush3.bf16.msra.mxu1 %v3308_v2 }
0x1029   :  { %3225 = vmatprep.subr.bf16.mxu1 %v3418_v1 }
0x102c   :  { %3226 = vmatpush3.bf16.msra.mxu1 %v3309_v0  ;;  %v2675_v0 = vrot.slane %v4051_v43, %v1384_v20 }
0x102d   :  { %3227 = vmatprep.subr.bf16.mxu1 %v3418_v1 }
0x1030   :  { %3228 = vmatpush3.bf16.msra.mxu1 %v3310_v25 }
0x1031   :  { %3229 = vmatprep.subr.bf16.mxu1 %v3418_v1 }
0x1034   :  { %3230 = vmatpush3.bf16.msra.mxu1 %v3311_v27 }
0x10fa   :  { %v2443_v45 = vpop.f32.mrb[76].mxu1 }
0x10fb   :  { %v2444_v46 = vadd.f32 %v2443_v45, %v2393_v38  ;;  %v3213_v39 = vpop.f32.mrb[77].mxu1 }
0x10fc   :  { %v2446_v47 = vpop.f32.mrb[78].mxu1 }
0x10fd   :  { %v2447_v48 = vadd.f32 %v2446_v47, %v2393_v38  ;;  %v3214_v49 = vpop.f32.mrb[79].mxu1  ;;  %v2450_v44 = vadd.f32 %v2444_v46, %v3834_v32 }
0x10ff   :  { %v2452_v52 = vsel %vm130_vm2, %v2450_v44, 0.0  ;;  %v2451_v53 = vadd.f32 %v2447_v48, %v3836_v33  ;;  %v3306_v33 = vld [vmem:[%s4140_s6 + $0x10] sm:$0xff]  }
0x1100   :  { %2453 = vadd.xlane.f32.xlu0 %v2452_v52  ;;  %3216 = vmatpush3.bf16.msra.mxu0 %v3306_v33 }
0x1101   :  { %v2455_v57 = vsel %vm130_vm2, %v2451_v53, 0.0  ;;  %3217 = vmatprep.subr.bf16.mxu0 %v3418_v1 }
0x1102   :  { %2456 = vadd.xlane.f32.xlu1 %v2455_v57 }
0x1104   :  { %3218 = vmatpush3.bf16.msra.mxu0 %v3307_v63 }
0x1105   :  { %3235 = vmatprep.subr.bf16.mxu0 %v3418_v1 }
0x118d   :  { %v2454_v51 = vpop.xlane.xlu0 %2453 }
0x118e   :  { %v2458_v58 = vmul.f32 0.03125, %v2454_v51 }
0x118f   :  { %v2457_v59 = vpop.xlane.xlu1 %2456 }
0x1190   :  { %v2460_v55 = vsub.f32 %v2450_v44, %v2458_v58  ;;  %v2459_v60 = vmul.f32 0.03125, %v2457_v59 }
0x1192   :  { %v2461_v19 = vsub.f32 %v2451_v53, %v2459_v60  ;;  %v2462_v61 = vmul.f32 %v2460_v55, %v2460_v55 }
0x1194   :  { %v2464_v42 = vsel %vm130_vm2, %v2462_v61, 0.0  ;;  %v2463_v62 = vmul.f32 %v2461_v19, %v2461_v19  ;;  %v3313_v61 = vld [vmem:[%s4144_s10 + $0x8] sm:$0xff]  }
0x1195   :  { %2465 = vadd.xlane.f32.xlu0 %v2464_v42 }
0x1196   :  { %v2467_v32 = vsel %vm130_vm2, %v2463_v62, 0.0 }
0x1199   :  { %2468 = vadd.xlane.f32.xlu0 %v2467_v32 }
0x1222   :  { %v2466_v3 = vpop.xlane.xlu0 %2465 }
0x1223   :  { %v2470_v4 = vmul.f32 0.03125, %v2466_v3 }
0x1225   :  { %v2472_v5 = vadd.f32 1e-05, %v2470_v4 }
0x1226   :  { %v2469_v7 = vpop.xlane.xlu0 %2468 }
0x1227   :  { %3386 = vrsqrt.f32 %v2472_v5  ;;  %v2471_v8 = vmul.f32 0.03125, %v2469_v7 }
0x1229   :  { %v2473_v9 = vadd.f32 1e-05, %v2471_v8 }
0x122b   :  { %3388 = vrsqrt.f32 %v2473_v9 }
0x1231   :  { %v3387_v12 = vpop.eup %3386 }
0x1232   :  { %v2476_v10 = vmul.f32 %v3387_v12, %v2460_v55 }
0x1234   :  { %v2482_v15 = vmul.f32 %v2481_v13, %v2476_v10 }
0x1235   :  { %v3389_v11 = vpop.eup %3388 }
0x1236   :  { %v2477_v6 = vmul.f32 %v3389_v11, %v2461_v19  ;;  %v2488_v17 = vadd.f32 %v2487_v16, %v2482_v15  ;;  %v3312_v19 = vld [vmem:[%s4144_s10] sm:$0xff]  }
0x1238   :  { %v2483_v14 = vmul.f32 %v2481_v13, %v2477_v6 }
0x123a   :  { %v2489_v21 = vadd.f32 %v2487_v16, %v2483_v14 }
0x123c   :  { %v2490_v22 = vpack.c.bf16 %v2489_v21, %v2488_v17 }
0x123e   :  { %3220 = vmatmul.mubr.msk.bf16.vlgmr.msra.gmra.mrb[76].mxu0 %vm130_vm2, %v2490_v22 }
0x123f   :  { %3239 = vmatprep.mubr.msk.bf16.mxu0 %vm3419_vm0, %v3418_v1  ;;  %3236 = vmatpush3.bf16.msra.mxu0 %v3312_v19 }
0x1240   :  { %3237 = vmatprep.subr.bf16.mxu0 %v3418_v1  ;;  %v2681_v1 = vrot.slane %v4051_v43, %v1390_v23 }
0x1243   :  { %3238 = vmatpush3.bf16.msra.mxu0 %v3313_v61 }
0x1311   :  { %v2553_v24 = vpop.f32.mrb[76].mxu0 }
0x1312   :  { %v2554_v26 = vadd.f32 %v2847_v18, %v2553_v24  ;;  %v3221_v28 = vpop.f32.mrb[77].mxu0 }
0x1313   :  { %v2556_v29 = vpop.f32.mrb[78].mxu0 }
0x1314   :  { %v2557_v30 = vadd.f32 %v2847_v18, %v2556_v29  ;;  %v3222_v31 = vpop.f32.mrb[79].mxu0  ;;  %v2560_v34 = vmax.f32 %v2554_v26, 0.0 }
0x1316   :  { %v2561_v35 = vmax.f32 %v2557_v30, 0.0 }
0x1318   :  { %v2562_v36 = vpack.c.bf16 %v2561_v35, %v2560_v34 }
0x131a   :  { %3232 = vmatmul.mubr.msk.bf16.vlgmr.msra.gmra.mrb[80].mxu1 %vm1309_vm6, %v2562_v36 }
0x13ed   :  { %v2637_v56 = vpop.f32.mrb[80].mxu1 }
0x13ee   :  { %v2638_v40 = vadd.f32 %v2637_v56, %v2575_v37  ;;  %v3233_v41 = vpop.f32.mrb[81].mxu1 }
0x13ef   :  { %v2640_v38 = vpop.f32.mrb[82].mxu1 }
0x13f0   :  { %v2641_v45 = vadd.f32 %v2640_v38, %v2575_v37  ;;  %v3234_v46 = vpop.f32.mrb[83].mxu1  ;;  %v2644_v39 = vadd.f32 %v2638_v40, %v2488_v17 }
0x13f2   :  { %v2646_v47 = vsel %vm130_vm2, %v2644_v39, 0.0  ;;  %v2645_v48 = vadd.f32 %v2641_v45, %v2489_v21 }
0x13f3   :  { %2647 = vadd.xlane.f32.xlu1 %v2646_v47 }
0x13f4   :  { %v2649_v49 = vsel %vm130_vm2, %v2645_v48, 0.0 }
0x13f5   :  { %2650 = vadd.xlane.f32.xlu0 %v2649_v49 }
0x1480   :  { %v2648_v44 = vpop.xlane.xlu1 %2647 }
0x1481   :  { %v2652_v52 = vmul.f32 0.03125, %v2648_v44 }
0x1482   :  { %v2651_v53 = vpop.xlane.xlu0 %2650 }
0x1483   :  { %v2654_v57 = vsub.f32 %v2644_v39, %v2652_v52  ;;  %v2653_v51 = vmul.f32 0.03125, %v2651_v53 }
0x1485   :  { %v2655_v50 = vsub.f32 %v2645_v48, %v2653_v51  ;;  %v2656_v58 = vmul.f32 %v2654_v57, %v2654_v57 }
0x1487   :  { %v2658_v59 = vsel %vm130_vm2, %v2656_v58, 0.0  ;;  %v2657_v55 = vmul.f32 %v2655_v50, %v2655_v50 }
0x1488   :  { %2659 = vadd.xlane.f32.xlu1 %v2658_v59 }
0x1489   :  { %v2661_v60 = vsel %vm130_vm2, %v2657_v55, 0.0 }
0x148a   :  { %2662 = vadd.xlane.f32.xlu0 %v2661_v60 }
0x1515   :  { %v2660_v42 = vpop.xlane.xlu1 %2659 }
0x1516   :  { %v2664_v62 = vmul.f32 0.03125, %v2660_v42 }
0x1517   :  { %v2663_v32 = vpop.xlane.xlu0 %2662 }
0x1518   :  { %v2666_v33 = vadd.f32 1e-05, %v2664_v62  ;;  %v2665_v63 = vmul.f32 0.03125, %v2663_v32 }
0x151a   :  { %3390 = vrsqrt.f32 %v2666_v33  ;;  %v2667_v2 = vadd.f32 1e-05, %v2665_v63 }
0x151c   :  { %3392 = vrsqrt.f32 %v2667_v2 }
0x1524   :  { %v3391_v3 = vpop.eup %3390 }
0x1525   :  { %v2670_v4 = vmul.f32 %v3391_v3, %v2654_v57 }
0x1526   :  { %v3393_v5 = vpop.eup %3392 }
0x1527   :  { %v2676_v7 = vmul.f32 %v2675_v0, %v2670_v4  ;;  %v2671_v8 = vmul.f32 %v3393_v5, %v2655_v50 }
0x1529   :  { %v2682_v9 = vadd.f32 %v2681_v1, %v2676_v7  ;;  %v2677_v12 = vmul.f32 %v2675_v0, %v2671_v8 }
0x152b   :  { %v2683_v13 = vadd.f32 %v2681_v1, %v2677_v12  ;;  %v2685_v10 = vrot.slane %v2682_v9, 7 }
0x152d   :  { %v2688_v11 = vrot.slane %v2683_v13, 6 }
0x152f   :  { %v2691_v15 = vsel %vm2690_vm7, %v2685_v10, %v2688_v11 }
0x1530   :  { %v2692_v6 = vpack.c.bf16 %v2691_v15, %v2691_v15 }
0x1532   :  { %3240 = vmatmul.mubr.msk.bf16.vlgmr.msra.gmra.mrb[80].mxu0 %vm130_vm2, %v2692_v6 }
0x1605   :  { %v2753_v20 = vpop.f32.mrb[80].mxu0 }
0x1606   :  { %v2754_v23 = vadd.f32 %v2864_v54, %v2753_v20  ;;  %v3241_v43 = vpop.f32.mrb[81].mxu0 }
0x1607   :  { %v2756_v16 = vpop.f32.mrb[82].mxu0 }
0x1608   :  { %2759 = vst [vmem:[#allocation2] sm:$0x3] %v2754_v23  ;;  %v3242_v14 = vpop.f32.mrb[83].mxu0 }
0x1609   :  { %3405 = shalt.err (!%p3402_p4)
}
0x160a   :  { %s3406_s11 = scalar_lea.hbm %s4146_s12, 32 }
0x160b   :  { %p3407_p5 = scmp.ne.s32.totalorder %s4146_s12, %s3406_s11  ;;  %p3410_p6 = scmp.lt.u32.totalorder %s3406_s11, %s4146_s12 }
0x160d   :  { %p3412_p7 = pnand %p3410_p6, %p3407_p5 }
0x160f   :  { %3415 = shalt.err (!%p3412_p7)
}
0x1610   :  { %2769 = dma.vmem_to_hbm [thread:$0]  %s2767_s0, 32, %s4146_s12, [#allocation3]  }
0x1611   :  { %3416 = dma.done.wait [#allocation3], 32  }
0x1612   :  { %3417 = vsyncadd [#allocation3], 4294967264 }
0x1613   :  { %2773 = vsyncpa [#allocation3], 1 }

</bundles_post_ra>
